<compile_context>
chip_gen: v7x
topology: tpu7x:2x2x1
jax: 0.10.0
libtpu: 0.0.40
codegen_flags: <defaults>
</compile_context>

<pallas_src>
import functools

import jax
import jax.numpy as jnp
import numpy as np
from jax import lax
from jax.experimental import pallas as pl
from jax.experimental.pallas import tpu as pltpu


# --------------------------- host-built operators --------------------------- #

def _upsample_matrix(n_in, n_out):
    """R (n_out, n_in): 1-D bilinear, align_corners=True (PyTorch nn.Upsample)."""
    R = np.zeros((n_out, n_in), np.float32)
    for o in range(n_out):
        if n_in == 1:
            R[o, 0] = 1.0
            continue
        src = o * (n_in - 1) / (n_out - 1)
        i0 = min(int(np.floor(src)), n_in - 1)
        i1 = min(i0 + 1, n_in - 1)
        w = src - i0
        R[o, i0] += 1.0 - w
        R[o, i1] += w
    return R


@functools.lru_cache(maxsize=None)
def _build_operators(H1, W1, H, W):
    """Constant operators, cached on shapes so they are built once per shape.

    Note: A1 is dense O(H1*W1 * L2); for resolutions far above this toy size
    it should be replaced by separable Ry/Rx factors (two small matmuls).
    """
    HW = H * W
    Mw = W + 1                                  # max |flat shift| of a 3x3 tap
    L1 = HW + 2 * Mw                            # conv1-out / conv2-in domain
    PB = ((2 * Mw + 127) // 128) * 128          # lane-aligned left margin of L2
    L2 = PB + HW + 2 * Mw                       # placement (conv1-in) domain
    Ho, Wo = 2 * H1, 2 * W1

    Ry = _upsample_matrix(H1, Ho)               # (Ho, H1)
    Rx = _upsample_matrix(W1, Wo)               # (Wo, W1)
    padT = (H - Ho) // 2
    padL = (W - Wo) // 2

    # Upsample + F.pad placement of x1 onto the margined flat grid.
    A1 = np.zeros((H1 * W1, L2), np.float32)
    for yo in range(Ho):
        ty = padT + yo
        if not (0 <= ty < H):
            continue
        for xo in range(Wo):
            tx = padL + xo
            if not (0 <= tx < W):
                continue
            A1[:, PB + ty * W + tx] = np.kron(Ry[yo], Rx[xo])

    # Per-tap validity masks (zero where the 3x3 neighbour is outside image).
    masks1 = np.zeros((9, L1), np.float32)      # on the conv1-output domain
    yy, xx = np.divmod(np.arange(HW), W)
    for k in range(9):
        dh, dw = k // 3 - 1, k % 3 - 1
        ok = (yy + dh >= 0) & (yy + dh < H) & (xx + dw >= 0) & (xx + dw < W)
        masks1[k, Mw:Mw + HW] = ok.astype(np.float32)
    masks2 = masks1[:, Mw:Mw + HW].copy()       # on the conv2-output domain

    return jnp.asarray(A1), jnp.asarray(masks1), jnp.asarray(masks2), PB, L1, L2


# --------------------------------- kernel ---------------------------------- #

def _make_kernel(C1, C2, Cmid, Cout, H, W, PB, L1, L2):
    Cin = C1 + C2
    HW = H * W
    Mw = W + 1
    K1 = 9 * Cin + 1                            # +1 = bias (ones) row
    K2 = 9 * Cmid + 1

    def kernel(x1f_ref, x2f_ref, a1_ref, m1_ref, m2_ref, w1_ref, w2_ref,
               out_ref, xcat_ref, rhs1_ref, rhs2_ref):
        # --- concatenated activation slab (Cin, L2) on the margined domain ---
        # rows [0, C2)    <- x2 (skip), placed with a lane-aligned store
        # rows [C2, Cin)  <- bilinear-upsampled + padded x1 (one MXU matmul,
        #                    placement/zero-halo baked into A1)
        xcat_ref[...] = jnp.zeros_like(xcat_ref)            # zero margins
        xcat_ref[0:C2, PB:PB + HW] = x2f_ref[0]
        xcat_ref[C2:Cin, :] = jnp.dot(x1f_ref[0], a1_ref[...],
                                      preferred_element_type=jnp.float32)

        xcat = xcat_ref[...]                                 # (Cin, L2)
        m1 = m1_ref[...]                                     # (9, L1)
        m2 = m2_ref[...]                                     # (9, HW)

        # --- conv1 (3x3, pad=1) + ReLU: stack 9 pre-masked shifted slices
        # along the contraction axis -> one (Cmid, K1)@(K1, L1) MXU matmul ---
        for k in range(9):
            dh, dw = k // 3 - 1, k % 3 - 1
            lo = PB - Mw + dh * W + dw
            rhs1_ref[k * Cin:(k + 1) * Cin, :] = (
                xcat[:, lo:lo + L1] * m1[k:k + 1, :])
        rhs1_ref[9 * Cin:K1, :] = jnp.ones((1, L1), jnp.float32)   # bias row
        h = jnp.maximum(jnp.dot(w1_ref[...], rhs1_ref[...],
                                preferred_element_type=jnp.float32), 0.0)

        # --- conv2 (3x3, pad=1) + ReLU: same scheme on the (Cout, HW) domain;
        # pre-masking with m2 also kills the (non-zero) h margins ---
        for k in range(9):
            dh, dw = k // 3 - 1, k % 3 - 1
            lo = Mw + dh * W + dw
            rhs2_ref[k * Cmid:(k + 1) * Cmid, :] = (
                h[:, lo:lo + HW] * m2[k:k + 1, :])
        rhs2_ref[9 * Cmid:K2, :] = jnp.ones((1, HW), jnp.float32)  # bias row
        out_ref[0] = jnp.maximum(
            jnp.dot(w2_ref[...], rhs2_ref[...],
                    preferred_element_type=jnp.float32), 0.0)

    return kernel


# -------------------------------- wrapper ----------------------------------- #

def up_fpn_forward(x1, x2, w1, b1, w2, b2):
    """Up_fpn.forward(x1, x2) with bilinear=True.  NCHW layout, f32."""
    N, C1, H1, W1 = x1.shape
    N2, C2, H, W = x2.shape
    Cmid, Cin = w1.shape[0], w1.shape[1]
    Cout = w2.shape[0]
    assert N == N2 and Cin == C1 + C2 and w2.shape[1] == Cmid

    HW = H * W
    K1 = 9 * Cin + 1
    K2 = 9 * Cmid + 1

    A1, masks1, masks2, PB, L1, L2 = _build_operators(H1, W1, H, W)

    # Stacked per-tap weights (Cout, 9*Cin + 1) with the bias as last column.
    w1_t = jnp.transpose(w1, (2, 3, 0, 1)).reshape(9, Cmid, Cin)
    w1_stk = jnp.concatenate(
        [jnp.transpose(w1_t, (1, 0, 2)).reshape(Cmid, 9 * Cin),
         b1.reshape(Cmid, 1)], axis=1).astype(jnp.float32)
    w2_t = jnp.transpose(w2, (2, 3, 0, 1)).reshape(9, Cout, Cmid)
    w2_stk = jnp.concatenate(
        [jnp.transpose(w2_t, (1, 0, 2)).reshape(Cout, 9 * Cmid),
         b2.reshape(Cout, 1)], axis=1).astype(jnp.float32)

    x1f = x1.reshape(N, C1, H1 * W1)            # layout-preserving reshapes
    x2f = x2.reshape(N, C2, HW)

    kernel = _make_kernel(C1, C2, Cmid, Cout, H, W, PB, L1, L2)

    def const_spec(shape):
        return pl.BlockSpec(shape, lambda n, _s=shape: (0,) * len(_s))

    out = pl.pallas_call(
        kernel,
        out_shape=jax.ShapeDtypeStruct((N, Cout, HW), jnp.float32),
        grid_spec=pltpu.PrefetchScalarGridSpec(
            num_scalar_prefetch=0,
            grid=(N,),
            in_specs=[
                pl.BlockSpec((1, C1, H1 * W1), lambda n: (n, 0, 0)),
                pl.BlockSpec((1, C2, HW), lambda n: (n, 0, 0)),
                const_spec((H1 * W1, L2)),      # A1: upsample + pad + place
                const_spec((9, L1)),            # conv1 tap masks
                const_spec((9, HW)),            # conv2 tap masks
                const_spec((Cmid, K1)),         # stacked w1 (+bias column)
                const_spec((Cout, K2)),         # stacked w2 (+bias column)
            ],
            out_specs=pl.BlockSpec((1, Cout, HW), lambda n: (n, 0, 0)),
            scratch_shapes=[
                pltpu.VMEM((Cin, L2), jnp.float32),   # concat/placement slab
                pltpu.VMEM((K1, L1), jnp.float32),    # stacked conv1 RHS
                pltpu.VMEM((K2, HW), jnp.float32),    # stacked conv2 RHS
            ]),
        compiler_params=pltpu.CompilerParams(
            dimension_semantics=("parallel",)),
    )(x1f, x2f, A1, masks1, masks2, w1_stk, w2_stk)

    return out.reshape(N, Cout, H, W)


# ----------------------------- pure-JAX reference -------------------------- #

def upsample_bilinear_x2_align_corners(x):
    """PyTorch nn.Upsample(scale_factor=2, mode='bilinear', align_corners=True)."""
    N, C, H, W = x.shape
    Ho, Wo = 2 * H, 2 * W

    def coords(n_in, n_out):
        if n_in == 1:
            return jnp.zeros((n_out,), jnp.float32)
        return jnp.arange(n_out, dtype=jnp.float32) * (n_in - 1) / (n_out - 1)

    ys, xs = coords(H, Ho), coords(W, Wo)
    y0 = jnp.floor(ys).astype(jnp.int32)
    x0 = jnp.floor(xs).astype(jnp.int32)
    y1 = jnp.minimum(y0 + 1, H - 1)
    x1 = jnp.minimum(x0 + 1, W - 1)
    wy = (ys - y0.astype(jnp.float32))[:, None]
    wx = (xs - x0.astype(jnp.float32))[None, :]

    def g(yi, xi):
        return x[:, :, yi, :][:, :, :, xi]

    top = g(y0, x0) * (1.0 - wx) + g(y0, x1) * wx
    bot = g(y1, x0) * (1.0 - wx) + g(y1, x1) * wx
    return top * (1.0 - wy) + bot * wy


def _pad_and_cat(x1u, x2):
    diffY = x2.shape[2] - x1u.shape[2]
    diffX = x2.shape[3] - x1u.shape[3]
    x1u = jnp.pad(x1u, ((0, 0), (0, 0),
                        (diffY // 2, diffY - diffY // 2),
                        (diffX // 2, diffX - diffX // 2)))
    return jnp.concatenate([x2, x1u], axis=1)


def _double_conv_reference(x, w1, b1, w2, b2):
    dn = ('NCHW', 'OIHW', 'NCHW')
    h = lax.conv_general_dilated(x, w1, (1, 1), 'SAME', dimension_numbers=dn,
                                 precision=lax.Precision.HIGHEST)
    h = jnp.maximum(h + b1[None, :, None, None], 0.0)
    y = lax.conv_general_dilated(h, w2, (1, 1), 'SAME', dimension_numbers=dn,
                                 precision=lax.Precision.HIGHEST)
    return jnp.maximum(y + b2[None, :, None, None], 0.0)


def up_fpn_reference(x1, x2, w1, b1, w2, b2):
    x = _pad_and_cat(upsample_bilinear_x2_align_corners(x1), x2)
    return _double_conv_reference(x, w1, b1, w2, b2)


# ---------------------------------- main ----------------------------------- #

if __name__ == "__main__":
    key = jax.random.PRNGKey(0)
    k1, k2, k3, k4, k5, k6 = jax.random.split(key, 6)

    # Up_fpn(in_channels=4, out_channels=4, bilinear=True)
    N = 2
    C1, C2 = 2, 2                 # x1 (low-res) and x2 (skip) channels; cat -> 4
    in_channels = C1 + C2
    out_channels = 4
    H1, W1 = 8, 8                 # x1 spatial
    H2, W2 = 16, 16               # x2 spatial (= 2x upsampled x1)

    x1 = jax.random.normal(k1, (N, C1, H1, W1), jnp.float32)
    x2 = jax.random.normal(k2, (N, C2, H2, W2), jnp.float32)

    # DoubleConv parameters (PyTorch Conv2d weight layout: OIHW).
    w1 = jax.random.normal(k3, (out_channels, in_channels, 3, 3), jnp.float32) * 0.1
    b1 = jax.random.normal(k4, (out_channels,), jnp.float32) * 0.1
    w2 = jax.random.normal(k5, (out_channels, out_channels, 3, 3), jnp.float32) * 0.1
    b2 = jax.random.normal(k6, (out_channels,), jnp.float32) * 0.1

    fwd = jax.jit(up_fpn_forward)
    y = fwd(x1, x2, w1, b1, w2, b2)
    y = jax.block_until_ready(y)

    y_ref = up_fpn_reference(x1, x2, w1, b1, w2, b2)
    # MXU f32 accumulation order differs from the XLA conv reference; any logic
    # error would be orders of magnitude larger than 5e-3.
    np.testing.assert_allclose(np.asarray(y), np.asarray(y_ref),
                               rtol=5e-3, atol=5e-3)

    print("KERNEL_OK")
</pallas_src>

<mosaic_0001>
module attributes {stable_mosaic.version = 11 : i64} {
  func.func @kernel(%arg0: i32, %arg1: memref<1x2x64xf32, #tpu.memory_space<vmem>>, %arg2: memref<1x2x256xf32, #tpu.memory_space<vmem>>, %arg3: memref<64x418xf32, #tpu.memory_space<vmem>>, %arg4: memref<9x290xf32, #tpu.memory_space<vmem>>, %arg5: memref<9x256xf32, #tpu.memory_space<vmem>>, %arg6: memref<4x37xf32, #tpu.memory_space<vmem>>, %arg7: memref<4x37xf32, #tpu.memory_space<vmem>>, %arg8: memref<1x4x256xf32, #tpu.memory_space<vmem>>, %arg9: memref<4x418xf32, #tpu.memory_space<vmem>>, %arg10: memref<37x290xf32, #tpu.memory_space<vmem>>, %arg11: memref<37x256xf32, #tpu.memory_space<vmem>>) attributes {dimension_semantics = [#tpu.dimension_semantics<parallel>], iteration_bounds = array<i64: 2>, scalar_prefetch = 0 : i64, scratch_operands = 3 : i64, tpu.core_type = #tpu.core_type<tc>, window_params = [{transform_indices = @transform_0, window_bounds = array<i64: 1, 2, 64>}, {transform_indices = @transform_1, window_bounds = array<i64: 1, 2, 256>}, {pipeline_mode = #tpu.pipeline_mode<synchronous>, transform_indices = @transform_2, window_bounds = array<i64: 64, 418>}, {pipeline_mode = #tpu.pipeline_mode<synchronous>, transform_indices = @transform_3, window_bounds = array<i64: 9, 290>}, {pipeline_mode = #tpu.pipeline_mode<synchronous>, transform_indices = @transform_4, window_bounds = array<i64: 9, 256>}, {pipeline_mode = #tpu.pipeline_mode<synchronous>, transform_indices = @transform_5, window_bounds = array<i64: 4, 37>}, {pipeline_mode = #tpu.pipeline_mode<synchronous>, transform_indices = @transform_6, window_bounds = array<i64: 4, 37>}, {transform_indices = @transform_7, window_bounds = array<i64: 1, 4, 256>}]} {
    %cst = arith.constant 0.000000e+00 : f32
    %0 = vector.broadcast %cst : f32 to vector<4x418xf32>
    %c0 = arith.constant 0 : index
    %c0_0 = arith.constant 0 : index
    %1 = vector.load %arg9[%c0, %c0_0] : memref<4x418xf32, #tpu.memory_space<vmem>>, vector<4x418xf32>
    tpu.vector_store %arg9[%c0, %c0_0], %0 {strides = array<i32>} : memref<4x418xf32, #tpu.memory_space<vmem>>, vector<4x418xf32>,
    %c0_1 = arith.constant 0 : index
    %c0_2 = arith.constant 0 : index
    %c0_3 = arith.constant 0 : index
    %2 = vector.load %arg2[%c0_1, %c0_2, %c0_3] : memref<1x2x256xf32, #tpu.memory_space<vmem>>, vector<1x2x256xf32>
    %3 = vector.shape_cast %2 : vector<1x2x256xf32> to vector<2x256xf32>
    %c0_4 = arith.constant 0 : index
    %c128 = arith.constant 128 : index
    %4 = vector.load %arg9[%c0_4, %c128] : memref<4x418xf32, #tpu.memory_space<vmem>>, vector<2x256xf32>
    tpu.vector_store %arg9[%c0_4, %c128], %3 {strides = array<i32>} : memref<4x418xf32, #tpu.memory_space<vmem>>, vector<2x256xf32>,
    %c0_5 = arith.constant 0 : index
    %c0_6 = arith.constant 0 : index
    %c0_7 = arith.constant 0 : index
    %5 = vector.load %arg1[%c0_5, %c0_6, %c0_7] : memref<1x2x64xf32, #tpu.memory_space<vmem>>, vector<1x2x64xf32>
    %6 = vector.shape_cast %5 : vector<1x2x64xf32> to vector<2x64xf32>
    %c0_8 = arith.constant 0 : index
    %c0_9 = arith.constant 0 : index
    %7 = vector.load %arg3[%c0_8, %c0_9] : memref<64x418xf32, #tpu.memory_space<vmem>>, vector<64x418xf32>
    %cst_10 = arith.constant dense<0.000000e+00> : vector<2x418xf32>
    %8 = tpu.matmul %6, %7, %cst_10 {dimension_numbers = #tpu.dot_dimension_numbers<[1], [0], [0], [1], [0, 0, 1, 1], [], []>} : vector<2x64xf32>, vector<64x418xf32>, vector<2x418xf32> -> vector<2x418xf32>
    %c2 = arith.constant 2 : index
    %c0_11 = arith.constant 0 : index
    %9 = vector.load %arg9[%c2, %c0_11] : memref<4x418xf32, #tpu.memory_space<vmem>>, vector<2x418xf32>
    tpu.vector_store %arg9[%c2, %c0_11], %8 {strides = array<i32>} : memref<4x418xf32, #tpu.memory_space<vmem>>, vector<2x418xf32>,
    %c0_12 = arith.constant 0 : index
    %c0_13 = arith.constant 0 : index
    %10 = vector.load %arg9[%c0_12, %c0_13] : memref<4x418xf32, #tpu.memory_space<vmem>>, vector<4x418xf32>
    %c0_14 = arith.constant 0 : index
    %c0_15 = arith.constant 0 : index
    %11 = vector.load %arg4[%c0_14, %c0_15] : memref<9x290xf32, #tpu.memory_space<vmem>>, vector<9x290xf32>
    %c0_16 = arith.constant 0 : index
    %c0_17 = arith.constant 0 : index
    %12 = vector.load %arg5[%c0_16, %c0_17] : memref<9x256xf32, #tpu.memory_space<vmem>>, vector<9x256xf32>
    %13 = vector.extract_strided_slice %10 {offsets = [0, 94], sizes = [4, 290], strides = [1, 1]} : vector<4x418xf32> to vector<4x290xf32>
    %14 = vector.extract_strided_slice %11 {offsets = [0, 0], sizes = [1, 290], strides = [1, 1]} : vector<9x290xf32> to vector<1x290xf32>
    %15 = vector.broadcast %14 : vector<1x290xf32> to vector<4x290xf32>
    %16 = arith.mulf %13, %15 : vector<4x290xf32>
    %c0_18 = arith.constant 0 : index
    %c0_19 = arith.constant 0 : index
    %17 = vector.load %arg10[%c0_18, %c0_19] : memref<37x290xf32, #tpu.memory_space<vmem>>, vector<4x290xf32>
    tpu.vector_store %arg10[%c0_18, %c0_19], %16 {strides = array<i32>} : memref<37x290xf32, #tpu.memory_space<vmem>>, vector<4x290xf32>,
    %18 = vector.extract_strided_slice %10 {offsets = [0, 95], sizes = [4, 290], strides = [1, 1]} : vector<4x418xf32> to vector<4x290xf32>
    %19 = vector.extract_strided_slice %11 {offsets = [1, 0], sizes = [1, 290], strides = [1, 1]} : vector<9x290xf32> to vector<1x290xf32>
    %20 = vector.broadcast %19 : vector<1x290xf32> to vector<4x290xf32>
    %21 = arith.mulf %18, %20 : vector<4x290xf32>
    %c4 = arith.constant 4 : index
    %c0_20 = arith.constant 0 : index
    %22 = vector.load %arg10[%c4, %c0_20] : memref<37x290xf32, #tpu.memory_space<vmem>>, vector<4x290xf32>
    tpu.vector_store %arg10[%c4, %c0_20], %21 {strides = array<i32>} : memref<37x290xf32, #tpu.memory_space<vmem>>, vector<4x290xf32>,
    %23 = vector.extract_strided_slice %10 {offsets = [0, 96], sizes = [4, 290], strides = [1, 1]} : vector<4x418xf32> to vector<4x290xf32>
    %24 = vector.extract_strided_slice %11 {offsets = [2, 0], sizes = [1, 290], strides = [1, 1]} : vector<9x290xf32> to vector<1x290xf32>
    %25 = vector.broadcast %24 : vector<1x290xf32> to vector<4x290xf32>
    %26 = arith.mulf %23, %25 : vector<4x290xf32>
    %c8 = arith.constant 8 : index
    %c0_21 = arith.constant 0 : index
    %27 = vector.load %arg10[%c8, %c0_21] : memref<37x290xf32, #tpu.memory_space<vmem>>, vector<4x290xf32>
    tpu.vector_store %arg10[%c8, %c0_21], %26 {strides = array<i32>} : memref<37x290xf32, #tpu.memory_space<vmem>>, vector<4x290xf32>,
    %28 = vector.extract_strided_slice %10 {offsets = [0, 110], sizes = [4, 290], strides = [1, 1]} : vector<4x418xf32> to vector<4x290xf32>
    %29 = vector.extract_strided_slice %11 {offsets = [3, 0], sizes = [1, 290], strides = [1, 1]} : vector<9x290xf32> to vector<1x290xf32>
    %30 = vector.broadcast %29 : vector<1x290xf32> to vector<4x290xf32>
    %31 = arith.mulf %28, %30 : vector<4x290xf32>
    %c12 = arith.constant 12 : index
    %c0_22 = arith.constant 0 : index
    %32 = vector.load %arg10[%c12, %c0_22] : memref<37x290xf32, #tpu.memory_space<vmem>>, vector<4x290xf32>
    tpu.vector_store %arg10[%c12, %c0_22], %31 {strides = array<i32>} : memref<37x290xf32, #tpu.memory_space<vmem>>, vector<4x290xf32>,
    %33 = vector.extract_strided_slice %10 {offsets = [0, 111], sizes = [4, 290], strides = [1, 1]} : vector<4x418xf32> to vector<4x290xf32>
    %34 = vector.extract_strided_slice %11 {offsets = [4, 0], sizes = [1, 290], strides = [1, 1]} : vector<9x290xf32> to vector<1x290xf32>
    %35 = vector.broadcast %34 : vector<1x290xf32> to vector<4x290xf32>
    %36 = arith.mulf %33, %35 : vector<4x290xf32>
    %c16 = arith.constant 16 : index
    %c0_23 = arith.constant 0 : index
    %37 = vector.load %arg10[%c16, %c0_23] : memref<37x290xf32, #tpu.memory_space<vmem>>, vector<4x290xf32>
    tpu.vector_store %arg10[%c16, %c0_23], %36 {strides = array<i32>} : memref<37x290xf32, #tpu.memory_space<vmem>>, vector<4x290xf32>,
    %38 = vector.extract_strided_slice %10 {offsets = [0, 112], sizes = [4, 290], strides = [1, 1]} : vector<4x418xf32> to vector<4x290xf32>
    %39 = vector.extract_strided_slice %11 {offsets = [5, 0], sizes = [1, 290], strides = [1, 1]} : vector<9x290xf32> to vector<1x290xf32>
    %40 = vector.broadcast %39 : vector<1x290xf32> to vector<4x290xf32>
    %41 = arith.mulf %38, %40 : vector<4x290xf32>
    %c20 = arith.constant 20 : index
    %c0_24 = arith.constant 0 : index
    %42 = vector.load %arg10[%c20, %c0_24] : memref<37x290xf32, #tpu.memory_space<vmem>>, vector<4x290xf32>
    tpu.vector_store %arg10[%c20, %c0_24], %41 {strides = array<i32>} : memref<37x290xf32, #tpu.memory_space<vmem>>, vector<4x290xf32>,
    %43 = vector.extract_strided_slice %10 {offsets = [0, 126], sizes = [4, 290], strides = [1, 1]} : vector<4x418xf32> to vector<4x290xf32>
    %44 = vector.extract_strided_slice %11 {offsets = [6, 0], sizes = [1, 290], strides = [1, 1]} : vector<9x290xf32> to vector<1x290xf32>
    %45 = vector.broadcast %44 : vector<1x290xf32> to vector<4x290xf32>
    %46 = arith.mulf %43, %45 : vector<4x290xf32>
    %c24 = arith.constant 24 : index
    %c0_25 = arith.constant 0 : index
    %47 = vector.load %arg10[%c24, %c0_25] : memref<37x290xf32, #tpu.memory_space<vmem>>, vector<4x290xf32>
    tpu.vector_store %arg10[%c24, %c0_25], %46 {strides = array<i32>} : memref<37x290xf32, #tpu.memory_space<vmem>>, vector<4x290xf32>,
    %48 = vector.extract_strided_slice %10 {offsets = [0, 127], sizes = [4, 290], strides = [1, 1]} : vector<4x418xf32> to vector<4x290xf32>
    %49 = vector.extract_strided_slice %11 {offsets = [7, 0], sizes = [1, 290], strides = [1, 1]} : vector<9x290xf32> to vector<1x290xf32>
    %50 = vector.broadcast %49 : vector<1x290xf32> to vector<4x290xf32>
    %51 = arith.mulf %48, %50 : vector<4x290xf32>
    %c28 = arith.constant 28 : index
    %c0_26 = arith.constant 0 : index
    %52 = vector.load %arg10[%c28, %c0_26] : memref<37x290xf32, #tpu.memory_space<vmem>>, vector<4x290xf32>
    tpu.vector_store %arg10[%c28, %c0_26], %51 {strides = array<i32>} : memref<37x290xf32, #tpu.memory_space<vmem>>, vector<4x290xf32>,
    %53 = vector.extract_strided_slice %10 {offsets = [0, 128], sizes = [4, 290], strides = [1, 1]} : vector<4x418xf32> to vector<4x290xf32>
    %54 = vector.extract_strided_slice %11 {offsets = [8, 0], sizes = [1, 290], strides = [1, 1]} : vector<9x290xf32> to vector<1x290xf32>
    %55 = vector.broadcast %54 : vector<1x290xf32> to vector<4x290xf32>
    %56 = arith.mulf %53, %55 : vector<4x290xf32>
    %c32 = arith.constant 32 : index
    %c0_27 = arith.constant 0 : index
    %57 = vector.load %arg10[%c32, %c0_27] : memref<37x290xf32, #tpu.memory_space<vmem>>, vector<4x290xf32>
    tpu.vector_store %arg10[%c32, %c0_27], %56 {strides = array<i32>} : memref<37x290xf32, #tpu.memory_space<vmem>>, vector<4x290xf32>,
    %cst_28 = arith.constant 1.000000e+00 : f32
    %58 = vector.broadcast %cst_28 : f32 to vector<1x290xf32>
    %c36 = arith.constant 36 : index
    %c0_29 = arith.constant 0 : index
    %59 = vector.load %arg10[%c36, %c0_29] : memref<37x290xf32, #tpu.memory_space<vmem>>, vector<1x290xf32>
    tpu.vector_store %arg10[%c36, %c0_29], %58 {strides = array<i32>} : memref<37x290xf32, #tpu.memory_space<vmem>>, vector<1x290xf32>,
    %c0_30 = arith.constant 0 : index
    %c0_31 = arith.constant 0 : index
    %60 = vector.load %arg6[%c0_30, %c0_31] : memref<4x37xf32, #tpu.memory_space<vmem>>, vector<4x37xf32>
    %c0_32 = arith.constant 0 : index
    %c0_33 = arith.constant 0 : index
    %61 = vector.load %arg10[%c0_32, %c0_33] : memref<37x290xf32, #tpu.memory_space<vmem>>, vector<37x290xf32>
    %cst_34 = arith.constant dense<0.000000e+00> : vector<4x290xf32>
    %62 = tpu.matmul %60, %61, %cst_34 {dimension_numbers = #tpu.dot_dimension_numbers<[1], [0], [0], [1], [0, 0, 1, 1], [], []>} : vector<4x37xf32>, vector<37x290xf32>, vector<4x290xf32> -> vector<4x290xf32>
    %cst_35 = arith.constant 0.000000e+00 : f32
    %63 = vector.broadcast %cst_35 : f32 to vector<4x290xf32>
    %64 = arith.maximumf %62, %63 : vector<4x290xf32>
    %65 = vector.extract_strided_slice %64 {offsets = [0, 0], sizes = [4, 256], strides = [1, 1]} : vector<4x290xf32> to vector<4x256xf32>
    %66 = vector.extract_strided_slice %12 {offsets = [0, 0], sizes = [1, 256], strides = [1, 1]} : vector<9x256xf32> to vector<1x256xf32>
    %67 = vector.broadcast %66 : vector<1x256xf32> to vector<4x256xf32>
    %68 = arith.mulf %65, %67 : vector<4x256xf32>
    %c0_36 = arith.constant 0 : index
    %c0_37 = arith.constant 0 : index
    %69 = vector.load %arg11[%c0_36, %c0_37] : memref<37x256xf32, #tpu.memory_space<vmem>>, vector<4x256xf32>
    tpu.vector_store %arg11[%c0_36, %c0_37], %68 {strides = array<i32>} : memref<37x256xf32, #tpu.memory_space<vmem>>, vector<4x256xf32>,
    %70 = vector.extract_strided_slice %64 {offsets = [0, 1], sizes = [4, 256], strides = [1, 1]} : vector<4x290xf32> to vector<4x256xf32>
    %71 = vector.extract_strided_slice %12 {offsets = [1, 0], sizes = [1, 256], strides = [1, 1]} : vector<9x256xf32> to vector<1x256xf32>
    %72 = vector.broadcast %71 : vector<1x256xf32> to vector<4x256xf32>
    %73 = arith.mulf %70, %72 : vector<4x256xf32>
    %c4_38 = arith.constant 4 : index
    %c0_39 = arith.constant 0 : index
    %74 = vector.load %arg11[%c4_38, %c0_39] : memref<37x256xf32, #tpu.memory_space<vmem>>, vector<4x256xf32>
    tpu.vector_store %arg11[%c4_38, %c0_39], %73 {strides = array<i32>} : memref<37x256xf32, #tpu.memory_space<vmem>>, vector<4x256xf32>,
    %75 = vector.extract_strided_slice %64 {offsets = [0, 2], sizes = [4, 256], strides = [1, 1]} : vector<4x290xf32> to vector<4x256xf32>
    %76 = vector.extract_strided_slice %12 {offsets = [2, 0], sizes = [1, 256], strides = [1, 1]} : vector<9x256xf32> to vector<1x256xf32>
    %77 = vector.broadcast %76 : vector<1x256xf32> to vector<4x256xf32>
    %78 = arith.mulf %75, %77 : vector<4x256xf32>
    %c8_40 = arith.constant 8 : index
    %c0_41 = arith.constant 0 : index
    %79 = vector.load %arg11[%c8_40, %c0_41] : memref<37x256xf32, #tpu.memory_space<vmem>>, vector<4x256xf32>
    tpu.vector_store %arg11[%c8_40, %c0_41], %78 {strides = array<i32>} : memref<37x256xf32, #tpu.memory_space<vmem>>, vector<4x256xf32>,
    %80 = vector.extract_strided_slice %64 {offsets = [0, 16], sizes = [4, 256], strides = [1, 1]} : vector<4x290xf32> to vector<4x256xf32>
    %81 = vector.extract_strided_slice %12 {offsets = [3, 0], sizes = [1, 256], strides = [1, 1]} : vector<9x256xf32> to vector<1x256xf32>
    %82 = vector.broadcast %81 : vector<1x256xf32> to vector<4x256xf32>
    %83 = arith.mulf %80, %82 : vector<4x256xf32>
    %c12_42 = arith.constant 12 : index
    %c0_43 = arith.constant 0 : index
    %84 = vector.load %arg11[%c12_42, %c0_43] : memref<37x256xf32, #tpu.memory_space<vmem>>, vector<4x256xf32>
    tpu.vector_store %arg11[%c12_42, %c0_43], %83 {strides = array<i32>} : memref<37x256xf32, #tpu.memory_space<vmem>>, vector<4x256xf32>,
    %85 = vector.extract_strided_slice %64 {offsets = [0, 17], sizes = [4, 256], strides = [1, 1]} : vector<4x290xf32> to vector<4x256xf32>
    %86 = vector.extract_strided_slice %12 {offsets = [4, 0], sizes = [1, 256], strides = [1, 1]} : vector<9x256xf32> to vector<1x256xf32>
    %87 = vector.broadcast %86 : vector<1x256xf32> to vector<4x256xf32>
    %88 = arith.mulf %85, %87 : vector<4x256xf32>
    %c16_44 = arith.constant 16 : index
    %c0_45 = arith.constant 0 : index
    %89 = vector.load %arg11[%c16_44, %c0_45] : memref<37x256xf32, #tpu.memory_space<vmem>>, vector<4x256xf32>
    tpu.vector_store %arg11[%c16_44, %c0_45], %88 {strides = array<i32>} : memref<37x256xf32, #tpu.memory_space<vmem>>, vector<4x256xf32>,
    %90 = vector.extract_strided_slice %64 {offsets = [0, 18], sizes = [4, 256], strides = [1, 1]} : vector<4x290xf32> to vector<4x256xf32>
    %91 = vector.extract_strided_slice %12 {offsets = [5, 0], sizes = [1, 256], strides = [1, 1]} : vector<9x256xf32> to vector<1x256xf32>
    %92 = vector.broadcast %91 : vector<1x256xf32> to vector<4x256xf32>
    %93 = arith.mulf %90, %92 : vector<4x256xf32>
    %c20_46 = arith.constant 20 : index
    %c0_47 = arith.constant 0 : index
    %94 = vector.load %arg11[%c20_46, %c0_47] : memref<37x256xf32, #tpu.memory_space<vmem>>, vector<4x256xf32>
    tpu.vector_store %arg11[%c20_46, %c0_47], %93 {strides = array<i32>} : memref<37x256xf32, #tpu.memory_space<vmem>>, vector<4x256xf32>,
    %95 = vector.extract_strided_slice %64 {offsets = [0, 32], sizes = [4, 256], strides = [1, 1]} : vector<4x290xf32> to vector<4x256xf32>
    %96 = vector.extract_strided_slice %12 {offsets = [6, 0], sizes = [1, 256], strides = [1, 1]} : vector<9x256xf32> to vector<1x256xf32>
    %97 = vector.broadcast %96 : vector<1x256xf32> to vector<4x256xf32>
    %98 = arith.mulf %95, %97 : vector<4x256xf32>
    %c24_48 = arith.constant 24 : index
    %c0_49 = arith.constant 0 : index
    %99 = vector.load %arg11[%c24_48, %c0_49] : memref<37x256xf32, #tpu.memory_space<vmem>>, vector<4x256xf32>
    tpu.vector_store %arg11[%c24_48, %c0_49], %98 {strides = array<i32>} : memref<37x256xf32, #tpu.memory_space<vmem>>, vector<4x256xf32>,
    %100 = vector.extract_strided_slice %64 {offsets = [0, 33], sizes = [4, 256], strides = [1, 1]} : vector<4x290xf32> to vector<4x256xf32>
    %101 = vector.extract_strided_slice %12 {offsets = [7, 0], sizes = [1, 256], strides = [1, 1]} : vector<9x256xf32> to vector<1x256xf32>
    %102 = vector.broadcast %101 : vector<1x256xf32> to vector<4x256xf32>
    %103 = arith.mulf %100, %102 : vector<4x256xf32>
    %c28_50 = arith.constant 28 : index
    %c0_51 = arith.constant 0 : index
    %104 = vector.load %arg11[%c28_50, %c0_51] : memref<37x256xf32, #tpu.memory_space<vmem>>, vector<4x256xf32>
    tpu.vector_store %arg11[%c28_50, %c0_51], %103 {strides = array<i32>} : memref<37x256xf32, #tpu.memory_space<vmem>>, vector<4x256xf32>,
    %105 = vector.extract_strided_slice %64 {offsets = [0, 34], sizes = [4, 256], strides = [1, 1]} : vector<4x290xf32> to vector<4x256xf32>
    %106 = vector.extract_strided_slice %12 {offsets = [8, 0], sizes = [1, 256], strides = [1, 1]} : vector<9x256xf32> to vector<1x256xf32>
    %107 = vector.broadcast %106 : vector<1x256xf32> to vector<4x256xf32>
    %108 = arith.mulf %105, %107 : vector<4x256xf32>
    %c32_52 = arith.constant 32 : index
    %c0_53 = arith.constant 0 : index
    %109 = vector.load %arg11[%c32_52, %c0_53] : memref<37x256xf32, #tpu.memory_space<vmem>>, vector<4x256xf32>
    tpu.vector_store %arg11[%c32_52, %c0_53], %108 {strides = array<i32>} : memref<37x256xf32, #tpu.memory_space<vmem>>, vector<4x256xf32>,
    %cst_54 = arith.constant 1.000000e+00 : f32
    %110 = vector.broadcast %cst_54 : f32 to vector<1x256xf32>
    %c36_55 = arith.constant 36 : index
    %c0_56 = arith.constant 0 : index
    %111 = vector.load %arg11[%c36_55, %c0_56] : memref<37x256xf32, #tpu.memory_space<vmem>>, vector<1x256xf32>
    tpu.vector_store %arg11[%c36_55, %c0_56], %110 {strides = array<i32>} : memref<37x256xf32, #tpu.memory_space<vmem>>, vector<1x256xf32>,
    %c0_57 = arith.constant 0 : index
    %c0_58 = arith.constant 0 : index
    %112 = vector.load %arg7[%c0_57, %c0_58] : memref<4x37xf32, #tpu.memory_space<vmem>>, vector<4x37xf32>
    %c0_59 = arith.constant 0 : index
    %c0_60 = arith.constant 0 : index
    %113 = vector.load %arg11[%c0_59, %c0_60] : memref<37x256xf32, #tpu.memory_space<vmem>>, vector<37x256xf32>
    %cst_61 = arith.constant dense<0.000000e+00> : vector<4x256xf32>
    %114 = tpu.matmul %112, %113, %cst_61 {dimension_numbers = #tpu.dot_dimension_numbers<[1], [0], [0], [1], [0, 0, 1, 1], [], []>} : vector<4x37xf32>, vector<37x256xf32>, vector<4x256xf32> -> vector<4x256xf32>
    %cst_62 = arith.constant 0.000000e+00 : f32
    %115 = vector.broadcast %cst_62 : f32 to vector<4x256xf32>
    %116 = arith.maximumf %114, %115 : vector<4x256xf32>
    %c0_63 = arith.constant 0 : index
    %c0_64 = arith.constant 0 : index
    %c0_65 = arith.constant 0 : index
    %117 = vector.load %arg8[%c0_63, %c0_64, %c0_65] : memref<1x4x256xf32, #tpu.memory_space<vmem>>, vector<1x4x256xf32>
    %118 = vector.shape_cast %117 : vector<1x4x256xf32> to vector<4x256xf32>
    %119 = vector.shape_cast %116 : vector<4x256xf32> to vector<1x4x256xf32>
    tpu.vector_store %arg8[%c0_63, %c0_64, %c0_65], %119 {strides = array<i32>} : memref<1x4x256xf32, #tpu.memory_space<vmem>>, vector<1x4x256xf32>,
    return
  }
  func.func @transform_0(%arg0: i32) -> (i32, i32, i32) {
    %c0_i32 = arith.constant 0 : i32
    %c0_i32_0 = arith.constant 0 : i32
    %c0_i32_1 = arith.constant 0 : i32
    return %arg0, %c0_i32, %c0_i32_0 : i32, i32, i32
  }
  func.func @transform_1(%arg0: i32) -> (i32, i32, i32) {
    %c0_i32 = arith.constant 0 : i32
    %c0_i32_0 = arith.constant 0 : i32
    %c0_i32_1 = arith.constant 0 : i32
    return %arg0, %c0_i32, %c0_i32_0 : i32, i32, i32
  }
  func.func @transform_2(%arg0: i32) -> (i32, i32) {
    %c0_i32 = arith.constant 0 : i32
    %c0_i32_0 = arith.constant 0 : i32
    %c0_i32_1 = arith.constant 0 : i32
    return %c0_i32, %c0_i32_0 : i32, i32
  }
  func.func @transform_3(%arg0: i32) -> (i32, i32) {
    %c0_i32 = arith.constant 0 : i32
    %c0_i32_0 = arith.constant 0 : i32
    %c0_i32_1 = arith.constant 0 : i32
    return %c0_i32, %c0_i32_0 : i32, i32
  }
  func.func @transform_4(%arg0: i32) -> (i32, i32) {
    %c0_i32 = arith.constant 0 : i32
    %c0_i32_0 = arith.constant 0 : i32
    %c0_i32_1 = arith.constant 0 : i32
    return %c0_i32, %c0_i32_0 : i32, i32
  }
  func.func @transform_5(%arg0: i32) -> (i32, i32) {
    %c0_i32 = arith.constant 0 : i32
    %c0_i32_0 = arith.constant 0 : i32
    %c0_i32_1 = arith.constant 0 : i32
    return %c0_i32, %c0_i32_0 : i32, i32
  }
  func.func @transform_6(%arg0: i32) -> (i32, i32) {
    %c0_i32 = arith.constant 0 : i32
    %c0_i32_0 = arith.constant 0 : i32
    %c0_i32_1 = arith.constant 0 : i32
    return %c0_i32, %c0_i32_0 : i32, i32
  }
  func.func @transform_7(%arg0: i32) -> (i32, i32, i32) {
    %c0_i32 = arith.constant 0 : i32
    %c0_i32_0 = arith.constant 0 : i32
    %c0_i32_1 = arith.constant 0 : i32
    return %arg0, %c0_i32, %c0_i32_0 : i32, i32, i32
  }
}

</mosaic_0001>

<bundles_post_ra>
// kernel: up_fpn_forward.1
= control target key start
LH: loop header
LB: loop body
LE: loop exit
PB: predicated region body
PF: predicated region fallthrough
CT: control target
= control target key end

     0   :  { %s1822_s24 = smov 0   ;;  %s2453_s0 = inlined_call_operand.vmem [shape: f32[2,2,64], index: 0, kind: input, shape index: {}]   ;;  %s2454_s1 = inlined_call_operand.vmem [shape: f32[2,2,256], index: 1, kind: input, shape index: {}]   ;;  %s2455_s2 = inlined_call_operand.vmem [shape: f32[64,418], index: 2, kind: input, shape index: {}]   ;;  %s2456_s3 = inlined_call_operand.vmem [shape: f32[9,290], index: 3, kind: input, shape index: {}]   ;;  %s2457_s4 = inlined_call_operand.vmem [shape: f32[9,256], index: 4, kind: input, shape index: {}]   ;;  %s2458_s5 = inlined_call_operand.vmem [shape: f32[4,37], index: 5, kind: input, shape index: {}]   ;;  %s2459_s6 = inlined_call_operand.vmem [shape: f32[4,37], index: 6, kind: input, shape index: {}]   ;;  %s2460_s7 = inlined_call_operand.vmem [shape: f32[2,4,256], index: 7, kind: output, shape index: {}]  }
   0x1 LB: > { %s1623_s25 = sadd.s32 4294967295, %s1760_s24   ;;  %p1627_p0 = scmp.ge.s32.totalorder %s1760_s24, 1  ;;  %s1760_s24 = sphi %s1822_s24, %s17_s24  }
   0x2   : > { %p246_p1 = scmp.lt.s32.totalorder %s1760_s24, 3 }
   0x4   : > { %p247_p2 = pnand %p1627_p0, %p246_p1 }
   0x5   : > { %v314_v0 = vld [vmem:[%s2455_s2 + $0x8] sm:$0xff] (!%p247_p2)  ;;  %v316_v2 = vld [vmem:[%s2455_s2 + $0x18] sm:$0xff] (!%p247_p2)  ;;  %v518_v3 = vlaneseq (!%p247_p2)  ;;  %v313_v6 = vld [vmem:[%s2455_s2] sm:$0xff] (!%p247_p2)  ;;  %v1762_v8 = vmov (!%p247_p2), 0.0   ;;  %p1862_p3 = scmp.lt.s32.totalorder (!%p247_p2), %s1623_s25, 1  ;;  %s1763_s15 = smov (!%p247_p2), 110  }
   0x6   : > { %250 = sbr.rel (%p247_p2) target bundleno = 1048 (0x418), region = 48  ;;  %v318_v1 = vld [vmem:[%s2455_s2 + $0x28] sm:$0xff] (!%p247_p2)  ;;  %v320_v5 = vld [vmem:[%s2455_s2 + $0x38] sm:$0xff] (!%p247_p2)  ;;  %v317_v7 = vld [vmem:[%s2455_s2 + $0x20] sm:$0xff] (!%p247_p2)  ;;  %413 = vmatprep.mubr.f32.mxu0 (!%p247_p2), %v1762_v8  ;;  %296 = vst [vmem:[#allocation2] sm:$0xff] (!%p247_p2), %v1762_v8  ;;  %484 = vmatprep.mubr.f32.mxu1 (!%p247_p2), %v1762_v8  ;;  %s1764_s16 = smov (!%p247_p2), 95  }
   0x7   : > { %v1672_v4 = vpack.c.bf16 (!%p247_p2), %v318_v1, %v314_v0  ;;  %v1688_v9 = vpack.c.bf16 (!%p247_p2), %v320_v5, %v316_v2  ;;  %v1674_v10 = vpack.c.bf16 (!%p247_p2), %v317_v7, %v313_v6  ;;  %v315_v11 = vld [vmem:[%s2455_s2 + $0x10] sm:$0xff] (!%p247_p2)  ;;  %v322_v13 = vld [vmem:[%s2455_s2 + $0x48] sm:$0xff] (!%p247_p2)  ;;  %v324_v16 = vld [vmem:[%s2455_s2 + $0x58] sm:$0xff] (!%p247_p2)  ;;  %v1885_v23 = vshrl.u32 (!%p247_p2), %v518_v3, 7  ;;  %s1765_s17 = smov (!%p247_p2), 96   ;;  %s1766_s18 = smov (!%p247_p2), 94  }
   0x8   : > { %v319_v12 = vld [vmem:[%s2455_s2 + $0x30] sm:$0xff] (!%p247_p2)  ;;  %v326_v15 = vld [vmem:[%s2455_s2 + $0x68] sm:$0xff] (!%p247_p2)  ;;  %v328_v17 = vld [vmem:[%s2455_s2 + $0x78] sm:$0xff] (!%p247_p2)  ;;  %vm345_vm0 = vcmask (!%p247_p2), 523264   ;;  %s1767_s19 = smov (!%p247_p2), 112   ;;  %s1768_s20 = smov (!%p247_p2), 127  }
   0x9   : > { %1673 = vmatprep.subr.bf16.mxu0 (!%p247_p2), %v1672_v4  ;;  %v1690_v14 = vpack.c.bf16 (!%p247_p2), %v319_v12, %v315_v11  ;;  %1689 = vmatprep.subr.bf16.mxu1 (!%p247_p2), %v1688_v9  ;;  %v1676_v18 = vpack.c.bf16 (!%p247_p2), %v326_v15, %v322_v13  ;;  %v1692_v19 = vpack.c.bf16 (!%p247_p2), %v328_v17, %v324_v16  ;;  %v321_v20 = vld [vmem:[%s2455_s2 + $0x40] sm:$0xff] (!%p247_p2)  ;;  %v323_v22 = vld [vmem:[%s2455_s2 + $0x50] sm:$0xff] (!%p247_p2)  ;;  %v330_v26 = vld [vmem:[%s2455_s2 + $0x88] sm:$0xff] (!%p247_p2)  ;;  %v1930_v41 = vsub.s32 (!%p247_p2), 3, %v1885_v23  ;;  %s1769_s22 = smov (!%p247_p2), 126   ;;  %s1770_s23 = smov (!%p247_p2), 111  }
   0xa   : > { %1675 = vmatpush1.bf16.msra.mxu0 (!%p247_p2), %v1674_v10  ;;  %v325_v21 = vld [vmem:[%s2455_s2 + $0x60] sm:$0xff] (!%p247_p2)  ;;  %v327_v25 = vld [vmem:[%s2455_s2 + $0x70] sm:$0xff] (!%p247_p2)  ;;  %v334_v27 = vld [vmem:[%s2455_s2 + $0xa8] sm:$0xff] (!%p247_p2)  ;;  %v1933_v42 = vsub.s32 (!%p247_p2), 1, %v1885_v23  ;;  %v1952_v51 = vsub.s32 (!%p247_p2), 2, %v1885_v23  ;;  %v1970_v56 = vsub.s32 (!%p247_p2), 0, %v1885_v23 }
   0xb   : > { %1691 = vmatpush1.bf16.msra.mxu1 (!%p247_p2), %v1690_v14  ;;  %v1678_v24 = vpack.c.bf16 (!%p247_p2), %v325_v21, %v321_v20  ;;  %1677 = vmatprep.subr.bf16.mxu0 (!%p247_p2), %v1676_v18  ;;  %v1694_v28 = vpack.c.bf16 (!%p247_p2), %v327_v25, %v323_v22  ;;  %v1680_v29 = vpack.c.bf16 (!%p247_p2), %v334_v27, %v330_v26  ;;  %v332_v30 = vld [vmem:[%s2455_s2 + $0x98] sm:$0xff] (!%p247_p2)  ;;  %v329_v32 = vld [vmem:[%s2455_s2 + $0x80] sm:$0xff] (!%p247_p2)  ;;  %v331_v35 = vld [vmem:[%s2455_s2 + $0x90] sm:$0xff] (!%p247_p2)  ;;  %v1993_v4 = vsub.s32 (!%p247_p2), 5, %v1885_v23  ;;  %s1772_s30 = smov (!%p247_p2), 33   ;;  %s1773_s8 = smov (!%p247_p2), 34  }
   0xc   : > { %1693 = vmatprep.subr.bf16.mxu1 (!%p247_p2), %v1692_v19  ;;  %v336_v31 = vld [vmem:[%s2455_s2 + $0xb8] sm:$0xff] (!%p247_p2)  ;;  %v333_v34 = vld [vmem:[%s2455_s2 + $0xa0] sm:$0xff] (!%p247_p2)  ;;  %v335_v36 = vld [vmem:[%s2455_s2 + $0xb0] sm:$0xff] (!%p247_p2)  ;;  %v2006_v13 = vsub.s32 (!%p247_p2), 7, %v1885_v23  ;;  %v2020_v20 = vsub.s32 (!%p247_p2), 6, %v1885_v23  ;;  %v2026_v22 = vsub.s32 (!%p247_p2), 4, %v1885_v23 }
   0xd   : > { %s2472_s25 = smov (!%p1862_p3, %s1623_s25), 1  ;;  %v1696_v33 = vpack.c.bf16 %v336_v31, %v332_v30  ;;  %v1682_v37 = vpack.c.bf16 %v333_v34, %v329_v32  ;;  %v338_v38 = vld [vmem:[%s2455_s2 + $0xc8] sm:$0xff]  ;;  %v340_v40 = vld [vmem:[%s2455_s2 + $0xd8] sm:$0xff]  ;;  %v1698_v43 = vpack.c.bf16 %v335_v36, %v331_v35  ;;  %v337_v46 = vld [vmem:[%s2455_s2 + $0xc0] sm:$0xff]  ;;  %vm297_vm1 = vcmask 1043456   ;;  %s1774_s21 = smov 18  }
   0xe   : > { %1679 = vmatpush1.bf16.msra.mxu0 %v1678_v24  ;;  %v342_v39 = vld [vmem:[%s2455_s2 + $0xe8] sm:$0xff]  ;;  %v344_v45 = vld [vmem:[%s2455_s2 + $0xf8] sm:$0xff]  ;;  %v341_v47 = vld [vmem:[%s2455_s2 + $0xe0] sm:$0xff]  ;;  %s1628_s29 = sshll.u32 %s2472_s25, 1  ;;  %s1651_s26 = sshll.u32 %s2472_s25, 2  ;;  %vm298_vm2 = vcmask 277508  }
   0xf   : > { %1695 = vmatpush1.bf16.msra.mxu1 %v1694_v28  ;;  %1681 = vmatprep.subr.bf16.mxu0 %v1680_v29  ;;  %v1684_v44 = vpack.c.bf16 %v342_v39, %v338_v38  ;;  %v1700_v48 = vpack.c.bf16 %v344_v45, %v340_v40  ;;  %v339_v49 = vld [vmem:[%s2455_s2 + $0xd0] sm:$0xff]  ;;  %v1686_v52 = vpack.c.bf16 %v341_v47, %v337_v46  ;;  %v1962_v54 = vld [vmem:[%s2456_s3] sm:$0xff]  ;;  %v1967_v55 = vld [vmem:[%s2456_s3 + $0x8] sm:$0xff]  ;;  %s285_s14 = scalar_lea.vmem %s2453_s0, %s1628_s29  ;;  %s290_s29 = scalar_lea.vmem %s2454_s1, %s1651_s26  ;;  %vm962_vm4 = vcmp.lt.s32.totalorder %v518_v3, 290 }
  0x10   : > { %1697 = vmatprep.subr.bf16.mxu1 %v1696_v33  ;;  %v343_v50 = vld [vmem:[%s2455_s2 + $0xf0] sm:$0xff]  ;;  %v672_v59 = vrot.slane %v1962_v54, %v1930_v41  ;;  %v676_v60 = vrot.slane %v1967_v55, %v1930_v41  ;;  %v568_v62 = vrot.slane %v1962_v54, %v1933_v42  ;;  %v572_v63 = vrot.slane %v1967_v55, %v1933_v42  ;;  %v312_v9 = vld [vmem:[%s285_s14] sm:$0x3]  ;;  %vm299_vm3 = vmor %vm298_vm2, %vm297_vm1  ;;  %s1775_s26 = smov 32   ;;  %s1776_s27 = smov 16  }
  0x11   : > { %v1957_v53 = vld [vmem:[%s2456_s3 + $0x10] sm:$0xff]  ;;  %v1702_v61 = vpack.c.bf16 %v343_v50, %v339_v49  ;;  %v620_v1 = vrot.slane %v1962_v54, %v1952_v51  ;;  %v624_v2 = vrot.slane %v1967_v55, %v1952_v51  ;;  %v521_v6 = vrot.slane %v1962_v54, %v1970_v56  ;;  %300 = vst.msk [vmem:[#allocation2 + $0x8] sm:$0xff] %vm299_vm3, %v1762_v8  ;;  %v1633_v33 = vld.sshfl [vmem:[%s290_s29] sm:$0x33 pattern:$0x76325410] }
  0x12   : > { %1683 = vmatpush1.bf16.msra.mxu0 %v1682_v37  ;;  %v680_v57 = vrot.slane %v1957_v53, %v1930_v41  ;;  %v576_v58 = vrot.slane %v1957_v53, %v1933_v42  ;;  %v684_v0 = vcombine.low %v672_v59, %v676_v60  ;;  %v580_v5 = vcombine.low %v568_v62, %v572_v63  ;;  %s1777_s28 = smov 1   ;;  %s1778_s29 = smov 17  }
  0x13   : > { %1699 = vmatpush1.bf16.msra.mxu1 %v1698_v43  ;;  %1685 = vmatprep.subr.bf16.mxu0 %v1684_v44  ;;  %v525_v7 = vrot.slane %v1967_v55, %v1970_v56  ;;  %v632_v10 = vcombine.low %v620_v1, %v624_v2  ;;  %v776_v11 = vrot.slane %v1962_v54, %v1993_v4  ;;  %v1771_v34 = vmov 1.0   ;;  %s1779_s9 = smov 2  }
  0x14   : > { %1701 = vmatprep.subr.bf16.mxu1 %v1700_v48  ;;  %687 = vrot.lane.b32.xlu1 %v680_v57, %s1763_s15  ;;  %v780_v12 = vrot.slane %v1967_v55, %v1993_v4  ;;  %v880_v16 = vrot.slane %v1962_v54, %v2006_v13  ;;  %v884_v17 = vrot.slane %v1967_v55, %v2006_v13  ;;  %vm502_vm5 = vcmask 1043458  }
  0x15   : > { %583 = vrot.lane.b32.xlu0 %v576_v58, %s1764_s16  ;;  %v533_v14 = vcombine.low %v521_v6, %v525_v7  ;;  %v628_v18 = vrot.slane %v1957_v53, %v1952_v51  ;;  %v784_v21 = vrot.slane %v1957_v53, %v1993_v4  ;;  %v529_v24 = vrot.slane %v1957_v53, %v1970_v56 }
  0x16   : > { %1687 = vmatpush1.bf16.msra.mxu0 %v1686_v52  ;;  %v788_v15 = vcombine.low %v776_v11, %v780_v12  ;;  %v892_v19 = vcombine.low %v880_v16, %v884_v17  ;;  %v828_v25 = vrot.slane %v1962_v54, %v2020_v20  ;;  %v832_v26 = vrot.slane %v1967_v55, %v2020_v20  ;;  %v1637_v16 = vld [vmem:[%s2456_s3 + $0x20] ss:$0 sm:$0xff] }
  0x17   : > { %1703 = vmatpush1.bf16.msra.mxu1 %v1702_v61  ;;  %v888_v27 = vrot.slane %v1957_v53, %v2006_v13  ;;  %v724_v23 = vrot.slane %v1962_v54, %v2026_v22  ;;  %v728_v28 = vrot.slane %v1967_v55, %v2026_v22  ;;  %v836_v31 = vrot.slane %v1957_v53, %v2020_v20 }
  0x18   : > { %685 = vrot.lane.b32.xlu1 %v684_v0, %s1763_s15  ;;  %v840_v29 = vcombine.low %v828_v25, %v832_v26  ;;  %v732_v32 = vrot.slane %v1957_v53, %v2026_v22  ;;  %311 = vst [vmem:[#allocation2 + $0x4] sm:$0x33] %v1633_v33  ;;  %965 = vst.msk [vmem:[#allocation3 + $0x64] ss:$8 sm:$0x7] %vm962_vm4, %v1771_v34  ;;  %vm503_vm6 = vcmask 277510  }
  0x19   : > { %1634 = vmatmul.mubr.msk.f32.vlgmr.msra.gmra.mrb[0].mxu0 %vm345_vm0, %v312_v9  ;;  %581 = vrot.lane.b32.xlu0 %v580_v5, %s1764_s16  ;;  %v736_v30 = vcombine.low %v724_v23, %v728_v28  ;;  %vm504_vm7 = vmor %vm503_vm6, %vm502_vm5  ;;  %vm2461_vm8 = vcmask 769024   ;;  %vm2462_vm9 = vcmask 777216   ;;  %vm2463_vm10 = vcmask 900096  }
  0x1a   : > { %1635 = vmatmul.mubr.msk.f32.vlgmr.msra.gmra.mrb[0].mxu1 %vm345_vm0, %v312_v9  ;;  %1061 = vmatprep.mubr.f32.mxu0 %v1762_v8  ;;  %vm639_vm11 = vcmask 785408   ;;  %vm795_vm12 = vcmask 916480   ;;  %vm899_vm13 = vcmask 1039360   ;;  %vm563_vm14 = vcmask 273408  }
  0x1b   : > { %vm743_vm15 = vcmask 908288   ;;  %vm847_vm0 = vcmask 1031168   ;;  %vm607_vm3 = vcmask 269312   ;;  %vm711_vm4 = vcmask 146432  }
  0x1c   : > { %633 = vrot.lane.b32.xlu1 %v632_v10, %s1765_s17  ;;  %vm555_vm5 = vcmask 277504   ;;  %vm659_vm6 = vcmask 261120  }
  0x1d   : > { %534 = vrot.lane.b32.xlu0 %v533_v14, %s1766_s18 }
  0x20   : > { %789 = vrot.lane.b32.xlu1 %v788_v15, %s1767_s19  ;;  %v1636_v15 = vld [vmem:[%s2456_s3 + $0x18] ss:$0 sm:$0xff] }
  0x21   : > { %635 = vrot.lane.b32.xlu0 %v628_v18, %s1765_s17  ;;  %v950_v26 = vcombine.low %v1636_v15, %v1637_v16 }
  0x24   : > { %893 = vrot.lane.b32.xlu1 %v892_v19, %s1768_s20 }
  0x25   : > { %791 = vrot.lane.b32.xlu0 %v784_v21, %s1767_s19 }
  0x28   : > { %536 = vrot.lane.b32.xlu1 %v529_v24, %s1766_s18  ;;  %v1638_v24 = vld [vmem:[%s2456_s3 + $0x28] ss:$0 sm:$0xff] }
  0x29   : > { %895 = vrot.lane.b32.xlu0 %v888_v27, %s1768_s20 }
  0x2c   : > { %841 = vrot.lane.b32.xlu1 %v840_v29, %s1769_s22 }
  0x2d   : > { %737 = vrot.lane.b32.xlu0 %v736_v30, %s1770_s23 }
  0x30   : > { %843 = vrot.lane.b32.xlu1 %v836_v31, %s1769_s22 }
  0x31   : > { %739 = vrot.lane.b32.xlu0 %v732_v32, %s1770_s23 }
  0x86   : > { %v2061_v35 = vpop.permute.xlu1 %687 }
  0x87   : > { %v2063_v36 = vpop.permute.xlu0 %583 }
  0x88   : > { %v586_v27 = vrot.slane %v2063_v36, 4 }
  0x8a   : > { %v2065_v37 = vpop.permute.xlu1 %685 }
  0x8b   : > { %v2067_v38 = vpop.permute.xlu0 %581  ;;  %v689_v6 = vrot.slane %v2065_v37, 4 }
  0x8c   : > { %v585_v58 = vrot.slane %v2067_v38, 4 }
  0x8d   : > { %v692_v10 = vsel %vm2463_vm10, %v689_v6, %v2065_v37 }
  0x8e   : > { %v2069_v39 = vpop.permute.xlu1 %633  ;;  %v588_v62 = vsel %vm2462_vm9, %v585_v58, %v2067_v38 }
  0x8f   : > { %v535_v40 = vpop.permute.xlu0 %534  ;;  %v637_v63 = vrot.slane %v2069_v39, 4 }
  0x90   : > { %v538_v57 = vrot.slane %v535_v40, 4 }
  0x92   : > { %v2071_v43 = vpop.permute.xlu1 %789  ;;  %v540_v17 = vsel %vm2461_vm8, %v538_v57, %v535_v40 }
  0x93   : > { %v636_v44 = vpop.permute.xlu0 %635  ;;  %v793_v11 = vrot.slane %v2071_v43, 4 }
  0x94   : > { %v638_v59 = vrot.slane %v636_v44, 4 }
  0x95   : > { %v796_v23 = vsel %vm795_vm12, %v793_v11, %v2071_v43 }
  0x96   : > { %v2073_v53 = vpop.permute.xlu1 %893  ;;  %v641_v7 = vsel %vm297_vm1, %v637_v63, %v638_v59 }
  0x97   : > { %v2075_v55 = vpop.permute.xlu0 %791  ;;  %v642_v12 = vsel %vm639_vm11, %v641_v7, %v636_v44  ;;  %v897_v21 = vrot.slane %v2073_v53, 4  ;;  %v640_v44 = vsel %vm639_vm11, %v637_v63, %v2069_v39 }
  0x99   : > { %v900_v33 = vsel %vm899_vm13, %v897_v21, %v2073_v53 }
  0x9a   : > { %v537_v60 = vpop.permute.xlu1 %536 }
  0x9b   : > { %v541_v61 = vsel %vm2461_vm8, %v538_v57, %v537_v60  ;;  %v2082_v0 = vpop.permute.xlu0 %895  ;;  %vm919_vm8 = vcmask 7168  }
  0x9e   : > { %v842_v30 = vpop.permute.xlu1 %841 }
  0x9f   : > { %v738_v18 = vpop.permute.xlu0 %737  ;;  %v845_v39 = vrot.slane %v842_v30, 4 }
  0xa0   : > { %v741_v38 = vrot.slane %v738_v18, 4 }
  0xa1   : > { %v848_v63 = vsel %vm847_vm0, %v845_v39, %v842_v30 }
  0xa2   : > { %v844_v59 = vpop.permute.xlu1 %843 }
  0xa3   : > { %v846_v7 = vrot.slane %v844_v59, 4 }
  0xa5   : > { %v849_v15 = vsel %vm297_vm1, %v845_v39, %v846_v7 }
  0xec   : > { %v415_v45 = vpop.f32.mrb[0].mxu0 }
  0xed   : > { %v486_v46 = vpop.f32.mrb[0].mxu1  ;;  %v417_v47 = vpop.f32.mrb[1].mxu0 }
  0xee   : > { %v495_v48 = vcombine.low %v415_v45, %v417_v47  ;;  %v488_v49 = vpop.f32.mrb[1].mxu1  ;;  %v740_v45 = vpop.permute.xlu0 %739  ;;  %v690_v47 = vrot.slane %v2061_v35, 4 }
  0xef   : > { %v496_v50 = vcombine.low %v486_v46, %v488_v49  ;;  %v742_v57 = vrot.slane %v740_v45, 4 }
  0xf0   : > { %v497_v52 = vrot.slane %v495_v48, 6  ;;  %v589_v48 = vsel %vm297_vm1, %v585_v58, %v586_v27  ;;  %v693_v60 = vsel %vm297_vm1, %v689_v6, %v690_v47 }
  0xf1   : > { %v498_v54 = vrot.slane %v496_v50, 6  ;;  %v590_v58 = vsel %vm2462_vm9, %v589_v48, %v2063_v36  ;;  %v694_v36 = vsel %vm2463_vm10, %v693_v60, %v2061_v35  ;;  %vm867_vm9 = vcmask 15360  }
  0xf2   : > { %501 = vst [vmem:[#allocation2] sm:$0xcc] %v497_v52  ;;  %vm987_vm10 = vcmask 1044480  }
  0xf3   : > { %505 = vst.msk [vmem:[#allocation2 + $0x8] sm:$0xcc] %vm504_vm7, %v498_v54  ;;  %v744_v54 = vsel %vm743_vm15, %v741_v38, %v738_v18  ;;  %vm815_vm7 = vcmask 130048  }
  0xf9   : > { %v2084_v1 = vld [vmem:[#allocation2] sm:$0xff] }
  0xfa   : > { %v2086_v2 = vld [vmem:[#allocation2 + $0x8] sm:$0xff]  ;;  %v2089_v5 = vmul.f32 %v588_v62, %v2084_v1  ;;  %v2104_v14 = vmul.f32 %v692_v10, %v2084_v1  ;;  %v2131_v28 = vmul.f32 %v540_v17, %v2084_v1  ;;  %v943_v29 = vrot.slane %v2084_v1, 4 }
  0xfb   : > { %v545_v9 = vmul.f32 %v541_v61, %v2086_v2  ;;  %v2114_v19 = vmul.f32 %v642_v12, %v2086_v2  ;;  %v944_v25 = vrot.slane %v2086_v2, 4  ;;  %v2135_v31 = vmul.f32 %v796_v23, %v2084_v1 }
  0xfc   : > { %601 = vrot.lane.b32.xlu0 %v2089_v5, %s1772_s30  ;;  %v645_v49 = vmul.f32 %v640_v44, %v2084_v1  ;;  %v2153_v50 = vmul.f32 %v900_v33, %v2084_v1  ;;  %v594_v61 = vmul.f32 %v590_v58, %v2086_v2  ;;  %v749_v62 = vmul.f32 %v744_v54, %v2084_v1  ;;  %v1645_v54 = vld [vmem:[%s2457_s4 + $0x18] ss:$0 sm:$0xff] }
  0xfd   : > { %553 = vrot.lane.b32.xlu1 %v545_v9, %s1773_s8  ;;  %v953_v32 = vmul.f32 %v1638_v24, %v944_v25  ;;  %v945_v40 = vsel %vm297_vm1, %v943_v29, %v944_v25  ;;  %v745_v9 = vsel %vm297_vm1, %v741_v38, %v742_v57  ;;  %v698_v37 = vmul.f32 %v694_v36, %v2086_v2 }
  0xfe   : > { %v952_v46 = vmul.f32 %v950_v26, %v945_v40  ;;  %v853_v6 = vmul.f32 %v848_v63, %v2084_v1  ;;  %v746_v10 = vsel %vm743_vm15, %v745_v9, %v740_v45  ;;  %v794_v12 = vrot.slane %v2075_v55, 4  ;;  %v2236_v40 = vld [vmem:[%s2457_s4] sm:$0xff] }
  0xff   : > { %959 = vst.msk [vmem:[#allocation3 + $0x70] sm:$0xf] %vm563_vm14, %v953_v32  ;;  %v750_v16 = vmul.f32 %v746_v10, %v2086_v2  ;;  %v850_v17 = vsel %vm847_vm0, %v849_v15, %v844_v59  ;;  %v598_v35 = vcombine.low %v594_v61, %v594_v61  ;;  %v702_v25 = vcombine.low %v698_v37, %v698_v37 }
 0x100   : > { %705 = vrot.lane.b32.xlu0 %v2104_v14, %s1774_s21  ;;  %v955_v52 = vcombine.high %v952_v46, %v952_v46  ;;  %957 = vst [vmem:[#allocation3 + $0x60] sm:$0xf] %v952_v46  ;;  %v797_v1 = vsel %vm297_vm1, %v793_v11, %v794_v12  ;;  %v854_v18 = vmul.f32 %v850_v17, %v2086_v2  ;;  %v898_v11 = vrot.slane %v2082_v0, 4 }
 0x101   : > { %655 = vrot.lane.b32.xlu1 %v2114_v19, %s1775_s26  ;;  %v798_v24 = vsel %vm795_vm12, %v797_v1, %v2075_v55  ;;  %v597_v43 = vcombine.low %v2089_v5, %v2089_v5  ;;  %v548_v27 = vcombine.high %v2131_v28, %v2131_v28  ;;  %v701_v55 = vcombine.low %v2104_v14, %v2104_v14 }
 0x102   : > { %958 = vst [vmem:[#allocation3 + $0x68] sm:$0xf] %v955_v52  ;;  %v802_v26 = vmul.f32 %v798_v24, %v2086_v2  ;;  %v901_v23 = vsel %vm297_vm1, %v897_v21, %v898_v11  ;;  %v649_v5 = vcombine.high %v645_v49, %v645_v49  ;;  %v1780_v29 = vmov 0.0|0.0  }
 0x103   : > { %1712 = vmatprep.subr.bf16.mxu1 %v1780_v29  ;;  %v902_v30 = vsel %vm899_vm13, %v901_v23, %v2082_v0  ;;  %v753_v21 = vcombine.high %v749_v62, %v749_v62  ;;  %v857_v33 = vcombine.high %v853_v6, %v853_v6  ;;  %v805_v0 = vcombine.low %v2135_v31, %v2135_v31 }
 0x104   : > { %549 = vrot.lane.b32.xlu0 %v2131_v28, %s1773_s8  ;;  %v650_v28 = vcombine.high %v2114_v19, %v2114_v19  ;;  %v906_v53 = vmul.f32 %v902_v30, %v2086_v2  ;;  %v806_v14 = vcombine.low %v802_v26, %v802_v26  ;;  %v754_v19 = vcombine.high %v750_v16, %v750_v16 }
 0x105   : > { %809 = vrot.lane.b32.xlu1 %v2135_v31, %s1776_s27  ;;  %v909_v2 = vcombine.low %v2153_v50, %v2153_v50  ;;  %v858_v38 = vcombine.high %v854_v18, %v854_v18  ;;  %vm1781_vm1 = vmmov 0   ;;  %v2231_v31 = vld [vmem:[%s2457_s4 + $0x8] sm:$0xff]  ;;  %v1156_v45 = vrot.slane %v2236_v40, %v1933_v42 }
 0x106   : > { %v910_v32 = vcombine.low %v906_v53, %v906_v53  ;;  %1669 = vmatprep.mubr.msk.f32.mxu1 %vm1781_vm1, %v1762_v8  ;;  %v1160_v44 = vrot.slane %v2231_v31, %v1933_v42  ;;  %v1235_v46 = vrot.slane %v2231_v31, %v1930_v41  ;;  %v1231_v47 = vrot.slane %v2236_v40, %v1930_v41 }
 0x107   : > { %v1199_v48 = vrot.slane %v2231_v31, %v1952_v51  ;;  %v1195_v42 = vrot.slane %v2236_v40, %v1952_v51  ;;  %v1306_v41 = vrot.slane %v2236_v40, %v1993_v4  ;;  %v1381_v51 = vrot.slane %v2236_v40, %v2006_v13 }
 0x108   : > { %651 = vrot.lane.b32.xlu0 %v645_v49, %s1775_s26  ;;  %v1310_v49 = vrot.slane %v2231_v31, %v1993_v4  ;;  %v1274_v52 = vrot.slane %v2231_v31, %v2026_v22  ;;  %v1270_v4 = vrot.slane %v2236_v40, %v2026_v22  ;;  %v1349_v39 = vrot.slane %v2231_v31, %v2020_v20  ;;  %v1644_v22 = vld [vmem:[%s2457_s4 + $0x10] ss:$0 sm:$0xff] }
 0x109   : > { %913 = vrot.lane.b32.xlu1 %v2153_v50, %s1777_s28  ;;  %v1385_v50 = vrot.slane %v2231_v31, %v2006_v13  ;;  %v1345_v13 = vrot.slane %v2236_v40, %v2020_v20  ;;  %vm763_vm1 = vcmask 138240  }
 0x10c   : > { %605 = vrot.lane.b32.xlu0 %v594_v61, %s1772_s30 }
 0x10d   : > { %755 = vrot.lane.b32.xlu1 %v749_v62, %s1778_s29 }
 0x110   : > { %709 = vrot.lane.b32.xlu0 %v698_v37, %s1774_s21 }
 0x111   : > { %859 = vrot.lane.b32.xlu1 %v853_v6, %s1779_s9 }
 0x114   : > { %759 = vrot.lane.b32.xlu0 %v750_v16, %s1778_s29 }
 0x115   : > { %603 = vrot.lane.b32.xlu1 %v598_v35, %s1772_s30 }
 0x118   : > { %863 = vrot.lane.b32.xlu0 %v854_v18, %s1779_s9 }
 0x119   : > { %707 = vrot.lane.b32.xlu1 %v702_v25, %s1774_s21 }
 0x11c   : > { %813 = vrot.lane.b32.xlu0 %v802_v26, %s1776_s27 }
 0x11d   : > { %599 = vrot.lane.b32.xlu1 %v597_v43, %s1772_s30 }
 0x120   : > { %551 = vrot.lane.b32.xlu0 %v548_v27, %s1773_s8 }
 0x121   : > { %703 = vrot.lane.b32.xlu1 %v701_v55, %s1774_s21 }
 0x124   : > { %653 = vrot.lane.b32.xlu0 %v649_v5, %s1775_s26 }
 0x125   : > { %657 = vrot.lane.b32.xlu1 %v650_v28, %s1775_s26 }
 0x128   : > { %811 = vrot.lane.b32.xlu0 %v806_v14, %s1776_s27 }
 0x129   : > { %757 = vrot.lane.b32.xlu1 %v753_v21, %s1778_s29 }
 0x12c   : > { %915 = vrot.lane.b32.xlu0 %v910_v32, %s1777_s28 }
 0x12d   : > { %861 = vrot.lane.b32.xlu1 %v857_v33, %s1779_s9 }
 0x130   : > { %807 = vrot.lane.b32.xlu0 %v805_v0, %s1776_s27 }
 0x131   : > { %761 = vrot.lane.b32.xlu1 %v754_v19, %s1778_s29 }
 0x134   : > { %911 = vrot.lane.b32.xlu0 %v909_v2, %s1777_s28 }
 0x135   : > { %865 = vrot.lane.b32.xlu1 %v858_v38, %s1779_s9 }
 0x138   : > { %917 = vrot.lane.b32.xlu0 %v906_v53, %s1777_s28 }
 0x139   : > { %1163 = vrot.lane.b32.xlu1 %v1156_v45, %s1777_s28 }
 0x13c   : > { %1165 = vrot.lane.b32.xlu0 %v1160_v44, %s1777_s28 }
 0x13d   : > { %1238 = vrot.lane.b32.xlu1 %v1231_v47, %s1776_s27 }
 0x140   : > { %1240 = vrot.lane.b32.xlu0 %v1235_v46, %s1776_s27 }
 0x141   : > { %1202 = vrot.lane.b32.xlu1 %v1195_v42, %s1779_s9 }
 0x144   : > { %1204 = vrot.lane.b32.xlu0 %v1199_v48, %s1779_s9 }
 0x145   : > { %1313 = vrot.lane.b32.xlu1 %v1306_v41, %s1774_s21 }
 0x148   : > { %1315 = vrot.lane.b32.xlu0 %v1310_v49, %s1774_s21 }
 0x149   : > { %1388 = vrot.lane.b32.xlu1 %v1381_v51, %s1772_s30 }
 0x14c   : > { %1390 = vrot.lane.b32.xlu0 %v1385_v50, %s1772_s30 }
 0x14d   : > { %1277 = vrot.lane.b32.xlu1 %v1270_v4, %s1778_s29 }
 0x150   : > { %1279 = vrot.lane.b32.xlu0 %v1274_v52, %s1778_s29 }
 0x151   : > { %1352 = vrot.lane.b32.xlu1 %v1345_v13, %s1775_s26 }
 0x154   : > { %1354 = vrot.lane.b32.xlu0 %v1349_v39, %s1775_s26 }
 0x155   : > { %1427 = vrot.lane.b32.xlu1 %v1644_v22, %s1773_s8 }
 0x158   : > { %1429 = vrot.lane.b32.xlu0 %v1645_v54, %s1773_s8 }
 0x16e   : > { %v602_v57 = vpop.permute.xlu0 %601 }
 0x16f   : > { %v554_v59 = vpop.permute.xlu1 %553 }
 0x170   : > { %564 = vst.msk [vmem:[#allocation3 + $0x10] sm:$0xf] %vm563_vm14, %v554_v59 }
 0x172   : > { %v706_v20 = vpop.permute.xlu0 %705 }
 0x173   : > { %v656_v58 = vpop.permute.xlu1 %655 }
 0x176   : > { %v550_v60 = vpop.permute.xlu0 %549 }
 0x177   : > { %v2289_v61 = vpop.permute.xlu1 %809 }
 0x17a   : > { %v652_v62 = vpop.permute.xlu0 %651 }
 0x17b   : > { %v2291_v63 = vpop.permute.xlu1 %913 }
 0x17e   : > { %v606_v7 = vpop.permute.xlu0 %605 }
 0x17f   : > { %v756_v9 = vpop.permute.xlu1 %755 }
 0x182   : > { %v710_v36 = vpop.permute.xlu0 %709 }
 0x183   : > { %v860_v37 = vpop.permute.xlu1 %859 }
 0x186   : > { %v2293_v6 = vpop.permute.xlu0 %759 }
 0x187   : > { %v604_v10 = vpop.permute.xlu1 %603 }
 0x188   : > { %v609_v12 = vsel %vm607_vm3, %v602_v57, %v604_v10  ;;  %v610_v15 = vsel %vm607_vm3, %v604_v10, %v606_v7 }
 0x189   : > { %615 = vst [vmem:[#allocation3 + $0x8] sm:$0xf0] %v609_v12  ;;  %616 = vst.msk [vmem:[#allocation3 + $0x10] sm:$0xf0] %vm298_vm2, %v610_v15  ;;  %v967_v15 = vld [vmem:[%s2458_s5] sm:$0xf] }
 0x18a   : > { %v2298_v16 = vpop.permute.xlu0 %863 }
 0x18b   : > { %v708_v17 = vpop.permute.xlu1 %707 }
 0x18c   : > { %v713_v35 = vsel %vm711_vm4, %v706_v20, %v708_v17  ;;  %v714_v1 = vsel %vm711_vm4, %v708_v17, %v710_v36  ;;  %v982_v17 = vld [vmem:[#allocation3 + $0x70] sm:$0x1f] }
 0x18d   : > { %719 = vst [vmem:[#allocation3 + $0x20] sm:$0xf0] %v713_v35  ;;  %720 = vst.msk [vmem:[#allocation3 + $0x28] sm:$0xf0] %vm298_vm2, %v714_v1 }
 0x18e   : > { %v814_v18 = vpop.permute.xlu0 %813 }
 0x18f   : > { %v600_v24 = vpop.permute.xlu1 %599 }
 0x190   : > { %v608_v25 = vsel %vm607_vm3, %v600_v24, %v602_v57  ;;  %v970_v50 = vld [vmem:[#allocation3 + $0x10] sm:$0xff] }
 0x191   : > { %614 = vst [vmem:[#allocation3] sm:$0xf0] %v608_v25 }
 0x192   : > { %v552_v26 = vpop.permute.xlu0 %551 }
 0x193   : > { %v704_v43 = vpop.permute.xlu1 %703  ;;  %v556_v11 = vsel %vm555_vm5, %v550_v60, %v552_v26  ;;  %v557_v27 = vsel %vm555_vm5, %v552_v26, %v554_v59 }
 0x194   : > { %v712_v55 = vsel %vm711_vm4, %v704_v43, %v706_v20  ;;  %561 = vst [vmem:[#allocation3] sm:$0xf] %v556_v11  ;;  %562 = vst [vmem:[#allocation3 + $0x8] sm:$0xf] %v557_v27 }
 0x195   : > { %718 = vst [vmem:[#allocation3 + $0x18] sm:$0xf0] %v712_v55 }
 0x196   : > { %v654_v23 = vpop.permute.xlu0 %653 }
 0x197   : > { %v658_v5 = vpop.permute.xlu1 %657  ;;  %v660_v30 = vsel %vm659_vm6, %v652_v62, %v654_v23  ;;  %v661_v28 = vsel %vm659_vm6, %v654_v23, %v656_v58 }
 0x198   : > { %v662_v53 = vsel %vm659_vm6, %v656_v58, %v658_v5  ;;  %666 = vst [vmem:[#allocation3 + $0x18] sm:$0xf] %v660_v30  ;;  %667 = vst [vmem:[#allocation3 + $0x20] sm:$0xf] %v661_v28 }
 0x199   : > { %668 = vst.msk [vmem:[#allocation3 + $0x28] sm:$0xf] %vm563_vm14, %v662_v53 }
 0x19a   : > { %v812_v14 = vpop.permute.xlu0 %811 }
 0x19b   : > { %v758_v21 = vpop.permute.xlu1 %757  ;;  %v817_v32 = vsel %vm815_vm7, %v2289_v61, %v812_v14  ;;  %v818_v33 = vsel %vm815_vm7, %v812_v14, %v814_v18  ;;  %v969_v38 = vld [vmem:[#allocation3 + $0x8] sm:$0xff]  ;;  %v968_v47 = vld [vmem:[#allocation3] sm:$0xff] }
 0x19c   : > { %v764_v0 = vsel %vm763_vm1, %v756_v9, %v758_v21  ;;  %v765_v19 = vsel %vm763_vm1, %v758_v21, %v2293_v6  ;;  %823 = vst [vmem:[#allocation3 + $0x38] sm:$0xf0] %v817_v32  ;;  %824 = vst.msk [vmem:[#allocation3 + $0x40] sm:$0xf0] %vm298_vm2, %v818_v33 }
 0x19d   : > { %770 = vst [vmem:[#allocation3 + $0x30] sm:$0xf] %v764_v0  ;;  %771 = vst [vmem:[#allocation3 + $0x38] sm:$0xf] %v765_v19 }
 0x19e   : > { %v916_v2 = vpop.permute.xlu0 %915 }
 0x19f   : > { %v862_v44 = vpop.permute.xlu1 %861  ;;  %v921_v45 = vsel %vm919_vm8, %v2291_v63, %v916_v2  ;;  %v972_v46 = vld [vmem:[#allocation3 + $0x20] sm:$0xff]  ;;  %v971_v48 = vld [vmem:[#allocation3 + $0x18] sm:$0xff] }
 0x1a0   : > { %v868_v42 = vsel %vm867_vm9, %v860_v37, %v862_v44  ;;  %v869_v49 = vsel %vm867_vm9, %v862_v44, %v2298_v16  ;;  %927 = vst [vmem:[#allocation3 + $0x50] sm:$0xf0] %v921_v45  ;;  %v1704_v41 = vpack.c.bf16 %v972_v46, %v969_v38  ;;  %v973_v51 = vld [vmem:[#allocation3 + $0x28] sm:$0xff]  ;;  %v1706_v52 = vpack.c.bf16 %v971_v48, %v968_v47 }
 0x1a1   : > { %874 = vst [vmem:[#allocation3 + $0x48] sm:$0xf] %v868_v42  ;;  %875 = vst [vmem:[#allocation3 + $0x50] sm:$0xf] %v869_v49  ;;  %v1713_v4 = vpack.c.bf16 %v973_v51, %v970_v50  ;;  %v1148_v42 = vrot.slane %v2231_v31, %v1970_v56  ;;  %v1144_v49 = vrot.slane %v2236_v40, %v1970_v56 }
 0x1a2   : > { %1705 = vmatprep.subr.bf16.mxu0 %v1704_v41  ;;  %v808_v39 = vpop.permute.xlu0 %807 }
 0x1a3   : > { %v762_v13 = vpop.permute.xlu1 %761  ;;  %1714 = vmatpush3.bf16.msra.mxu1 %v1713_v4  ;;  %v816_v54 = vsel %vm815_vm7, %v808_v39, %v2289_v61  ;;  %1707 = vmatpush1.bf16.msra.mxu0 %v1706_v52 }
 0x1a4   : > { %v766_v22 = vsel %vm763_vm1, %v2293_v6, %v762_v13  ;;  %822 = vst [vmem:[#allocation3 + $0x30] sm:$0xf0] %v816_v54  ;;  %1715 = vmatprep.subr.bf16.mxu1 %v1780_v29  ;;  %v975_v60 = vld [vmem:[#allocation3 + $0x38] sm:$0xff] }
 0x1a5   : > { %772 = vst.msk [vmem:[#allocation3 + $0x40] sm:$0xf] %vm563_vm14, %v766_v22 }
 0x1a6   : > { %v912_v57 = vpop.permute.xlu0 %911 }
 0x1a7   : > { %v866_v59 = vpop.permute.xlu1 %865  ;;  %v920_v20 = vsel %vm919_vm8, %v912_v57, %v2291_v63  ;;  %v981_v63 = vld [vmem:[#allocation3 + $0x68] sm:$0x1f] }
 0x1a8   : > { %v870_v58 = vsel %vm867_vm9, %v2298_v16, %v866_v59  ;;  %926 = vst [vmem:[#allocation3 + $0x48] sm:$0xf0] %v920_v20  ;;  %v978_v61 = vld [vmem:[#allocation3 + $0x50] sm:$0xff]  ;;  %v980_v16 = vld [vmem:[#allocation3 + $0x60] sm:$0x1f] }
 0x1a9   : > { %876 = vst.msk [vmem:[#allocation3 + $0x58] sm:$0xf] %vm563_vm14, %v870_v58  ;;  %v1708_v62 = vpack.c.bf16 %v978_v61, %v975_v60  ;;  %vm983_vm14 = vcmask 302080  }
 0x1aa   : > { %v918_v7 = vpop.permute.xlu0 %917 }
 0x1ab   : > { %1709 = vmatprep.subr.bf16.mxu0 %v1708_v62  ;;  %v922_v29 = vsel %vm919_vm8, %v916_v2, %v918_v7  ;;  %v974_v9 = vld [vmem:[#allocation3 + $0x30] sm:$0xff]  ;;  %v1164_v1 = vpop.permute.xlu1 %1163 }
 0x1ac   : > { %928 = vst.msk [vmem:[#allocation3 + $0x58] sm:$0xf0] %vm298_vm2, %v922_v29  ;;  %v976_v6 = vld [vmem:[#allocation3 + $0x40] sm:$0xff]  ;;  %vm1453_vm2 = vcmp.lt.s32.totalorder %v518_v3, 256 }
 0x1ad   : > { %1456 = vst.msk [vmem:[#allocation4 + $0x44] ss:$8 sm:$0x3] %vm1453_vm2, %v1771_v34 }
 0x1ae   : > { %v1166_v35 = vpop.permute.xlu0 %1165 }
 0x1af   : > { %v977_v36 = vld [vmem:[#allocation3 + $0x48] sm:$0xff]  ;;  %v1239_v24 = vpop.permute.xlu1 %1238  ;;  %v1167_v53 = vsel %vm919_vm8, %v1164_v1, %v1166_v35  ;;  %vm2465_vm8 = vcmask 900096  }
 0x1b0   : > { %v1710_v37 = vpack.c.bf16 %v977_v36, %v974_v9 }
 0x1b2   : > { %1711 = vmatpush1.bf16.msra.mxu0 %v1710_v37  ;;  %v1241_v18 = vpop.permute.xlu0 %1240 }
 0x1b3   : > { %1639 = vmatprep.subr.msk.mxu0 %vm987_vm10, %v981_v63  ;;  %v979_v10 = vld [vmem:[#allocation3 + $0x58] sm:$0xff]  ;;  %v1203_v26 = vpop.permute.xlu1 %1202  ;;  %v1242_v33 = vsel %vm815_vm7, %v1239_v24, %v1241_v18 }
 0x1b4   : > { %v1716_v12 = vpack.c.bf16 %v979_v10, %v976_v6 }
 0x1b6   : > { %1640 = vmatpush1.msk.msra.mxu0 %vm987_vm10, %v980_v16  ;;  %1717 = vmatpush3.bf16.msra.mxu1 %v1716_v12  ;;  %v1205_v25 = vpop.permute.xlu0 %1204 }
 0x1b7   : > { %1641 = vmatmul.mubr.msk.f32.vlgmr.msra.gmra.mrb[2].mxu0 %vm983_vm14, %v967_v15  ;;  %1667 = vmatprep.subr.mxu1 %v1762_v8  ;;  %v2346_v11 = vpop.permute.xlu1 %1313  ;;  %v1206_v30 = vsel %vm867_vm9, %v1203_v26, %v1205_v25  ;;  %vm2466_vm9 = vmmov %vm2465_vm8 }
 0x1b8   : > { %1542 = vmatprep.mubr.f32.mxu0 %v1762_v8 }
 0x1ba   : > { %1668 = vmatpush3.msk.msra.mxu1 %vm987_vm10, %v982_v17  ;;  %v1316_v43 = vpop.permute.xlu0 %1315 }
 0x1bb   : > { %1670 = vmatmul.mubr.msk.f32.vlgmr.msra.gmra.mrb[2].mxu1 %vm983_vm14, %v967_v15  ;;  %v2348_v5 = vpop.permute.xlu1 %1388  ;;  %v1317_v0 = vsel %vm711_vm4, %v2346_v11, %v1316_v43 }
 0x1be   : > { %v1391_v27 = vpop.permute.xlu0 %1390 }
 0x1bf   : > { %v1392_v28 = vsel %vm607_vm3, %v2348_v5, %v1391_v27  ;;  %v1278_v56 = vpop.permute.xlu1 %1277 }
 0x1c2   : > { %v1280_v14 = vpop.permute.xlu0 %1279 }
 0x1c3   : > { %v1281_v61 = vsel %vm763_vm1, %v1278_v56, %v1280_v14  ;;  %v1353_v7 = vpop.permute.xlu1 %1352 }
 0x1c6   : > { %v1355_v50 = vpop.permute.xlu0 %1354 }
 0x1c7   : > { %v1356_v36 = vsel %vm659_vm6, %v1353_v7, %v1355_v50  ;;  %v1428_v17 = vpop.permute.xlu1 %1427 }
 0x28a   : > { %v1063_v55 = vpop.f32.mrb[2].mxu0 }
 0x28b   : > { %v1065_v23 = vpop.f32.mrb[3].mxu0  ;;  %v2372_v41 = vmax.f32 %v1063_v55, 0.0 }
 0x28c   : > { %v2350_v8 = vmax.f32 %v1065_v23, 0.0 }
 0x28d   : > { %v1210_v51 = vmul.f32 %v1203_v26, %v2372_v41  ;;  %v1149_v39 = vmul.f32 %v1144_v49, %v2372_v41  ;;  %v1285_v31 = vmul.f32 %v1278_v56, %v2372_v41  ;;  %v1171_v60 = vmul.f32 %v1164_v1, %v2372_v41 }
 0x28e   : > { %v1134_v21 = vpop.f32.mrb[2].mxu1  ;;  %v1211_v32 = vmul.f32 %v1206_v30, %v2350_v8  ;;  %v1172_v38 = vmul.f32 %v1167_v53, %v2350_v8  ;;  %v1247_v44 = vmul.f32 %v1242_v33, %v2350_v8  ;;  %v1322_v45 = vmul.f32 %v1317_v0, %v2350_v8 }
 0x28f   : > { %v2360_v19 = vmax.f32 %v1134_v21, 0.0  ;;  %v1671_v2 = vpop.f32.mrb[3].mxu1  ;;  %v1397_v46 = vmul.f32 %v1392_v28, %v2350_v8  ;;  %v1150_v4 = vmul.f32 %v1148_v42, %v2350_v8  ;;  %1151 = vst [vmem:[#allocation4] sm:$0xf] %v1149_v39  ;;  %v1286_v62 = vmul.f32 %v1281_v61, %v2350_v8 }
 0x290   : > { %v1177_v29 = vrot.slane %v1171_v60, 4  ;;  %v1246_v9 = vmul.f32 %v1239_v24, %v2372_v41  ;;  %v1361_v37 = vmul.f32 %v1356_v36, %v2350_v8  ;;  %v1360_v6 = vmul.f32 %v1353_v7, %v2372_v41 }
 0x291   : > { %v1212_v47 = vmul.f32 %v1205_v25, %v2360_v19  ;;  %v1287_v48 = vmul.f32 %v1280_v14, %v2360_v19  ;;  %v1362_v52 = vmul.f32 %v1355_v50, %v2360_v19  ;;  %1152 = vst [vmem:[#allocation4 + $0x8] sm:$0xf] %v1150_v4  ;;  %v1173_v40 = vmul.f32 %v1166_v35, %v2360_v19  ;;  %v1430_v35 = vpop.permute.xlu0 %1429 }
 0x292   : > { %v1323_v13 = vmul.f32 %v1316_v43, %v2360_v19  ;;  %v1248_v57 = vmul.f32 %v1241_v18, %v2360_v19  ;;  %v1398_v59 = vmul.f32 %v1391_v27, %v2360_v19  ;;  %v1252_v63 = vrot.slane %v1246_v9, 4 }
 0x293   : > { %1220 = vrot.lane.b32.xlu0 %v1212_v47, %s1769_s22  ;;  %1295 = vrot.lane.b32.xlu1 %v1287_v48, %s1770_s23  ;;  %v1179_v54 = vrot.slane %v1173_v40, 4  ;;  %v1178_v10 = vrot.slane %v1172_v38, 4  ;;  %v1253_v12 = vrot.slane %v1247_v44, 4  ;;  %v1328_v15 = vrot.slane %v1322_v45, 4 }
 0x294   : > { %v1329_v22 = vrot.slane %v1323_v13, 4  ;;  %v1254_v20 = vrot.slane %v1248_v57, 4  ;;  %v1404_v58 = vrot.slane %v1398_v59, 4  ;;  %v1321_v16 = vmul.f32 %v2346_v11, %v2372_v41 }
 0x295   : > { %v1403_v18 = vrot.slane %v1397_v46, 4  ;;  %v1396_v24 = vmul.f32 %v2348_v5, %v2372_v41  ;;  %v1431_v25 = vsel %vm555_vm5, %v1428_v17, %v1430_v35  ;;  %v1437_v11 = vmul.f32 %v1430_v35, %v2360_v19 }
 0x296   : > { %v1327_v1 = vrot.slane %v1321_v16, 4  ;;  %v1436_v26 = vmul.f32 %v1431_v25, %v2350_v8  ;;  %v1435_v27 = vmul.f32 %v1428_v17, %v2372_v41  ;;  %v1458_v16 = vld [vmem:[%s2459_s6] sm:$0xf] }
 0x297   : > { %1216 = vrot.lane.b32.xlu0 %v1210_v51, %s1769_s22  ;;  %1370 = vrot.lane.b32.xlu1 %v1362_v52, %s1765_s17  ;;  %v1402_v43 = vrot.slane %v1396_v24, 4 }
 0x29b   : > { %1291 = vrot.lane.b32.xlu0 %v1285_v31, %s1770_s23  ;;  %1218 = vrot.lane.b32.xlu1 %v1211_v32, %s1769_s22 }
 0x29f   : > { %1184 = vrot.lane.b32.xlu0 %v1179_v54, %s1768_s20  ;;  %1334 = vrot.lane.b32.xlu1 %v1329_v22, %s1763_s15 }
 0x2a3   : > { %1259 = vrot.lane.b32.xlu0 %v1254_v20, %s1767_s19  ;;  %1409 = vrot.lane.b32.xlu1 %v1404_v58, %s1764_s16 }
 0x2a7   : > { %1293 = vrot.lane.b32.xlu0 %v1286_v62, %s1770_s23  ;;  %1180 = vrot.lane.b32.xlu1 %v1177_v29, %s1768_s20 }
 0x2ab   : > { %1255 = vrot.lane.b32.xlu1 %v1252_v63, %s1767_s19  ;;  %1368 = vrot.lane.b32.xlu0 %v1361_v37, %s1765_s17 }
 0x2af   : > { %1182 = vrot.lane.b32.xlu1 %v1178_v10, %s1768_s20  ;;  %1366 = vrot.lane.b32.xlu0 %v1360_v6, %s1765_s17  ;;  %s1652_s17 = sshll.u32 %s2472_s25, 3 }
 0x2b0   : > { %s295_s20 = scalar_lea.vmem %s2460_s7, %s1652_s17 }
 0x2b3   : > { %1257 = vrot.lane.b32.xlu1 %v1253_v12, %s1767_s19  ;;  %1332 = vrot.lane.b32.xlu0 %v1328_v15, %s1763_s15 }
 0x2b7   : > { %1330 = vrot.lane.b32.xlu1 %v1327_v1, %s1763_s15  ;;  %1407 = vrot.lane.b32.xlu0 %v1403_v18, %s1764_s16 }
 0x2bb   : > { %1405 = vrot.lane.b32.xlu1 %v1402_v43, %s1764_s16  ;;  %1443 = vrot.lane.b32.xlu0 %v1436_v26, %s1766_s18 }
 0x2bf   : > { %1445 = vrot.lane.b32.xlu1 %v1437_v11, %s1766_s18  ;;  %1441 = vrot.lane.b32.xlu0 %v1435_v27, %s1766_s18 }
 0x305   : > { %v1296_v55 = vpop.permute.xlu1 %1295  ;;  %v1221_v23 = vpop.permute.xlu0 %1220 }
 0x309   : > { %v1371_v5 = vpop.permute.xlu1 %1370  ;;  %v1217_v8 = vpop.permute.xlu0 %1216 }
 0x30d   : > { %v1219_v30 = vpop.permute.xlu1 %1218  ;;  %v1292_v3 = vpop.permute.xlu0 %1291 }
 0x30e   : > { %v1222_v34 = vsel %vm847_vm0, %v1217_v8, %v1219_v30  ;;  %v1223_v28 = vsel %vm847_vm0, %v1219_v30, %v1221_v23 }
 0x30f   : > { %1226 = vst [vmem:[#allocation4 + $0x10] sm:$0xf] %v1222_v34  ;;  %1227 = vst [vmem:[#allocation4 + $0x18] sm:$0xf] %v1223_v28 }
 0x311   : > { %v1335_v53 = vpop.permute.xlu1 %1334  ;;  %v1185_v14 = vpop.permute.xlu0 %1184 }
 0x315   : > { %v1410_v21 = vpop.permute.xlu1 %1409  ;;  %v1260_v32 = vpop.permute.xlu0 %1259 }
 0x319   : > { %v1181_v33 = vpop.permute.xlu1 %1180  ;;  %v1294_v0 = vpop.permute.xlu0 %1293 }
 0x31a   : > { %v1297_v19 = vsel %vm743_vm15, %v1292_v3, %v1294_v0  ;;  %v1298_v2 = vsel %vm743_vm15, %v1294_v0, %v1296_v55 }
 0x31b   : > { %1301 = vst [vmem:[#allocation4 + $0x20] sm:$0xf] %v1297_v19  ;;  %1302 = vst [vmem:[#allocation4 + $0x28] sm:$0xf] %v1298_v2 }
 0x31d   : > { %v1256_v38 = vpop.permute.xlu1 %1255  ;;  %v1369_v44 = vpop.permute.xlu0 %1368 }
 0x31e   : > { %v1373_v45 = vsel %vm639_vm11, %v1369_v44, %v1371_v5 }
 0x31f   : > { %1377 = vst [vmem:[#allocation4 + $0x38] sm:$0xf] %v1373_v45 }
 0x321   : > { %v1183_v46 = vpop.permute.xlu1 %1182  ;;  %v1367_v47 = vpop.permute.xlu0 %1366 }
 0x322   : > { %v1186_v48 = vsel %vm899_vm13, %v1181_v33, %v1183_v46  ;;  %v1187_v42 = vsel %vm899_vm13, %v1183_v46, %v1185_v14  ;;  %v1372_v49 = vsel %vm639_vm11, %v1367_v47, %v1369_v44  ;;  %vm2467_vm13 = vcmask 777216  }
 0x323   : > { %1190 = vst [vmem:[#allocation4] sm:$0xf0] %v1186_v48  ;;  %1191 = vst [vmem:[#allocation4 + $0x8] sm:$0xf0] %v1187_v42 }
 0x324   : > { %1376 = vst [vmem:[#allocation4 + $0x30] sm:$0xf] %v1372_v49  ;;  %vm2468_vm11 = vmmov %vm2467_vm13 }
 0x325   : > { %v1258_v41 = vpop.permute.xlu1 %1257  ;;  %v1333_v50 = vpop.permute.xlu0 %1332 }
 0x326   : > { %v1261_v51 = vsel %vm795_vm12, %v1256_v38, %v1258_v41  ;;  %v1262_v52 = vsel %vm795_vm12, %v1258_v41, %v1260_v32  ;;  %v1337_v4 = vsel %vm2465_vm8, %v1333_v50, %v1335_v53  ;;  %vm2469_vm12 = vcmask 769024  }
 0x327   : > { %1265 = vst [vmem:[#allocation4 + $0x10] sm:$0xf0] %v1261_v51  ;;  %1266 = vst [vmem:[#allocation4 + $0x18] sm:$0xf0] %v1262_v52 }
 0x328   : > { %1341 = vst [vmem:[#allocation4 + $0x28] sm:$0xf0] %v1337_v4  ;;  %vm2470_vm15 = vmmov %vm2469_vm12 }
 0x329   : > { %v1331_v39 = vpop.permute.xlu1 %1330  ;;  %v1408_v56 = vpop.permute.xlu0 %1407 }
 0x32a   : > { %v1336_v31 = vsel %vm2466_vm9, %v1331_v39, %v1333_v50  ;;  %v1412_v40 = vsel %vm2467_vm13, %v1408_v56, %v1410_v21  ;;  %v1460_v22 = vld [vmem:[#allocation4 + $0x8] sm:$0xff]  ;;  %v1459_v20 = vld [vmem:[#allocation4] sm:$0xff] }
 0x32b   : > { %1340 = vst [vmem:[#allocation4 + $0x20] sm:$0xf0] %v1336_v31  ;;  %1416 = vst [vmem:[#allocation4 + $0x38] sm:$0xf0] %v1412_v40 }
 0x32d   : > { %v1406_v13 = vpop.permute.xlu1 %1405  ;;  %v1444_v54 = vpop.permute.xlu0 %1443 }
 0x32e   : > { %v1411_v57 = vsel %vm2468_vm11, %v1406_v13, %v1408_v56  ;;  %v1462_v59 = vld [vmem:[#allocation4 + $0x18] sm:$0xff]  ;;  %v1461_v58 = vld [vmem:[#allocation4 + $0x10] sm:$0xff] }
 0x32f   : > { %1415 = vst [vmem:[#allocation4 + $0x30] sm:$0xf0] %v1411_v57  ;;  %v1718_v60 = vpack.c.bf16 %v1462_v59, %v1460_v22  ;;  %v1720_v61 = vpack.c.bf16 %v1461_v58, %v1459_v20  ;;  %v1464_v36 = vld [vmem:[#allocation4 + $0x28] sm:$0xff] }
 0x331   : > { %v1446_v62 = vpop.permute.xlu1 %1445  ;;  %1719 = vmatprep.subr.bf16.mxu0 %v1718_v60  ;;  %v1442_v7 = vpop.permute.xlu0 %1441 }
 0x332   : > { %v1448_v29 = vsel %vm2469_vm12, %v1444_v54, %v1446_v62  ;;  %v1447_v9 = vsel %vm2470_vm15, %v1442_v7, %v1444_v54  ;;  %1721 = vmatpush1.bf16.msra.mxu0 %v1720_v61  ;;  %v1466_v37 = vld [vmem:[#allocation4 + $0x38] sm:$0xff]  ;;  %v1463_v6 = vld [vmem:[#allocation4 + $0x20] sm:$0xff] }
 0x333   : > { %1452 = vst [vmem:[#allocation4 + $0x48] sm:$0xf] %v1448_v29  ;;  %1451 = vst [vmem:[#allocation4 + $0x40] sm:$0xf] %v1447_v9  ;;  %v1722_v63 = vpack.c.bf16 %v1466_v37, %v1464_v36 }
 0x335   : > { %1723 = vmatprep.subr.bf16.mxu0 %v1722_v63 }
 0x336   : > { %v1465_v10 = vld [vmem:[#allocation4 + $0x30] sm:$0xff] }
 0x337   : > { %v1724_v12 = vpack.c.bf16 %v1465_v10, %v1463_v6 }
 0x339   : > { %1725 = vmatpush1.bf16.msra.mxu0 %v1724_v12 }
 0x33a   : > { %v1468_v15 = vld [vmem:[#allocation4 + $0x48] sm:$0x1f]  ;;  %v1467_v17 = vld [vmem:[#allocation4 + $0x40] sm:$0x1f] }
 0x33b   : > { %1646 = vmatprep.subr.msk.mxu0 %vm987_vm10, %v1468_v15 }
 0x33d   : > { %1647 = vmatpush1.msk.msra.mxu0 %vm987_vm10, %v1467_v17 }
 0x33e   : > { %1648 = vmatmul.mubr.msk.f32.vlgmr.msra.gmra.mrb[4].mxu0 %vm983_vm14, %v1458_v16 }
 0x411   : > { %v1544_v35 = vpop.f32.mrb[4].mxu0 }
 0x412   : > { %v1549_v1 = vmax.f32 %v1544_v35, 0.0  ;;  %v1546_v18 = vpop.f32.mrb[5].mxu0 }
 0x413   : > { %v1550_v24 = vmax.f32 %v1546_v18, 0.0 }
 0x415   : > { %v1553_v25 = vcombine.low %v1549_v1, %v1550_v24 }
 0x417   : > { %1555 = vst [vmem:[%s295_s20] sm:$0xff] %v1553_v25 }
 0x418 PF: > { %s17_s24 = sadd.s32 1, %s1760_s24  }
 0x419   : > { %p14_p4 = scmp.ge.s32.totalorder %s17_s24, 4  }
 0x41b   :  { %16 = sbr.rel (!%p14_p4) target bundleno = 1 (0x1), region = 83 }

</bundles_post_ra>
